<compile_context>
chip_gen: v7x
topology: tpu7x:2x2x1
jax: 0.10.0
libtpu: 0.0.40
codegen_flags: <defaults>
</compile_context>

<pallas_src>
import jax
import jax.numpy as jnp
from jax import lax
from jax.experimental import pallas as pl
from jax.experimental.pallas import tpu as pltpu


def _vmem_limit_bytes():
    # Generation-aware scoped-VMEM cap (v5e/v6e: 128 MiB, v7x: 64 MiB per TC).
    try:
        cap = int(pltpu.get_tpu_info().vmem_capacity_bytes)
    except Exception:
        cap = 128 * 1024 * 1024
    return int(min(cap // 2, 64 * 1024 * 1024))


_VMEM_LIMIT = _vmem_limit_bytes()


def _band_size(total_rows, default):
    """Row-band size: large bands amortize per-step overhead, but keep >= 2
    bands whenever possible so both v7x TensorCores get work."""
    if total_rows <= 1:
        return 1
    return max(1, min(default, -(-total_rows // 2)))


# ----------------------------------------------------------------------------
# Fused stem: conv1(1->8) + ReLU + conv2(8->16) + ReLU + H-half of MaxPool2d(2)
# ----------------------------------------------------------------------------
def _make_stem_kernel(hp, tp, w1_cols, w2_cols):
    def kernel(x_ref, w1_ref, b1_ref, w2_ref, b2_ref, o_ref):
        band = pl.program_id(1)
        w1 = w1_ref[...]          # (9, 8, 1)  f32
        b1 = b1_ref[...]          # (8, 1)     f32
        w2 = w2_ref[...]          # (9, 16, 8) bf16
        b2 = b2_ref[...]          # (16, 1)    f32

        def body(r, carry):
            p = jnp.minimum(band * tp + r, hp - 1)        # pooled output row
            # The 6 input rows feeding conv1 rows 2p .. 2p+3.
            xrows = [x_ref[0, 2 * p + t].astype(jnp.float32) for t in range(6)]

            # conv1 (Cin=1): 9-tap broadcast-multiply accumulation on the VPU.
            h1 = []
            for k in range(4):
                acc = jnp.zeros((8, w1_cols), jnp.float32)
                for dy in range(3):
                    row = xrows[k + dy]
                    for dx in range(3):
                        acc = acc + w1[dy * 3 + dx] * row[:, dx:dx + w1_cols]
                h1.append(jnp.maximum(acc + b1, 0.0).astype(jnp.bfloat16))

            # conv2: 9 small MXU matmuls per row, f32 accumulation.
            rows = []
            for q in range(2):
                acc2 = jnp.zeros((16, w2_cols), jnp.float32)
                for dy in range(3):
                    hrow = h1[q + dy]
                    for dx in range(3):
                        acc2 = acc2 + jnp.dot(
                            w2[dy * 3 + dx], hrow[:, dx:dx + w2_cols],
                            preferred_element_type=jnp.float32)
                rows.append(jnp.maximum(acc2 + b2, 0.0))

            # H-direction half of the 2x2 max pool.
            o_ref[0, r] = jnp.maximum(rows[0], rows[1]).astype(o_ref.dtype)
            return carry

        lax.fori_loop(0, tp, body, 0)

    return kernel


def stem_conv_conv_pool(x_nhcw, w1, b1, w2, b2, *, tp_default=16):
    n, h, _, w = x_nhcw.shape
    w1_cols = w - 2
    w2_cols, h2_rows = w1_cols - 2, h - 4
    hp, wp = h2_rows // 2, w2_cols // 2
    tp = _band_size(hp, tp_default)
    bands = -(-hp // tp)

    w1t = jnp.transpose(w1, (0, 1, 3, 2)).reshape(9, 8, 1).astype(jnp.float32)
    w2t = jnp.transpose(w2, (0, 1, 3, 2)).reshape(9, 16, 8).astype(jnp.bfloat16)

    flops = 2 * n * hp * (4 * 9 * 8 * w1_cols + 2 * 9 * 16 * 8 * w2_cols)
    bytes_accessed = 2 * n * h * w + 2 * n * hp * 16 * w2_cols + 4 * 1300

    out = pl.pallas_call(
        _make_stem_kernel(hp, tp, w1_cols, w2_cols),
        out_shape=jax.ShapeDtypeStruct((n, hp, 16, w2_cols), jnp.bfloat16),
        grid=(n, bands),
        in_specs=[
            pl.BlockSpec((1, h, 1, w), lambda i, j: (i, 0, 0, 0)),   # image, fetched once per n
            pl.BlockSpec((9, 8, 1), lambda i, j: (0, 0, 0)),         # resident weights
            pl.BlockSpec((8, 1), lambda i, j: (0, 0)),
            pl.BlockSpec((9, 16, 8), lambda i, j: (0, 0, 0)),
            pl.BlockSpec((16, 1), lambda i, j: (0, 0)),
        ],
        out_specs=pl.BlockSpec((1, tp, 16, w2_cols), lambda i, j: (i, j, 0, 0)),
        compiler_params=pltpu.CompilerParams(
            dimension_semantics=("parallel", "parallel"),
            vmem_limit_bytes=_VMEM_LIMIT),
        cost_estimate=pl.CostEstimate(
            flops=int(flops), transcendentals=0,
            bytes_accessed=int(bytes_accessed)),
    )(x_nhcw.astype(jnp.bfloat16), w1t,
      b1.reshape(8, 1).astype(jnp.float32), w2t,
      b2.reshape(16, 1).astype(jnp.float32))

    # W-direction half of MaxPool2d(2): pairs are lane-adjacent, finish with a
    # free HBM regroup + max in XLA.
    out = out[..., :2 * wp].reshape(n, hp, 16, wp, 2)
    return jnp.max(out, axis=-1)                         # (n, hp, 16, wp) bf16


# ----------------------------------------------------------------------------
# Generic 3x3 conv (+ReLU), optionally fused with the trailing 1x1 conv5+ReLU
# ----------------------------------------------------------------------------
def _make_conv_kernel(ho, wo, tr, with_head):
    def kernel(*refs):
        if with_head:
            x_ref, w_ref, b_ref, wh_ref, bh_ref, o_ref = refs
        else:
            x_ref, w_ref, b_ref, o_ref = refs
        band = pl.program_id(1)
        w = w_ref[...]                       # (9, Cout, Cin) bf16
        bias = b_ref[...]                    # (Cout, 1)      f32
        if with_head:
            wh = wh_ref[...]                 # (1, Cout)      bf16
            bh = bh_ref[...]                 # (1, 1)         f32
        cout = w_ref.shape[1]

        def body(r, carry):
            row = jnp.minimum(band * tr + r, ho - 1)
            acc = jnp.zeros((cout, wo), jnp.float32)
            for dy in range(3):
                xrow = x_ref[0, row + dy]    # (Cin, Win) bf16
                for dx in range(3):
                    acc = acc + jnp.dot(w[dy * 3 + dx], xrow[:, dx:dx + wo],
                                        preferred_element_type=jnp.float32)
            h = jnp.maximum(acc + bias, 0.0)
            if with_head:
                out = jnp.dot(wh, h.astype(jnp.bfloat16),
                              preferred_element_type=jnp.float32)
                o_ref[0, r] = jnp.maximum(out + bh, 0.0).astype(o_ref.dtype)
            else:
                o_ref[0, r] = h.astype(o_ref.dtype)
            return carry

        lax.fori_loop(0, tr, body, 0)

    return kernel


def conv3x3_nhcw(x_nhcw, w_hwio, b, *, head=None, out_dtype=jnp.bfloat16,
                 tr_default=32):
    n, hin, cin, win = x_nhcw.shape
    kh, kw, wcin, cout = w_hwio.shape
    assert (kh, kw, wcin) == (3, 3, cin)
    ho, wo = hin - 2, win - 2
    tr = _band_size(ho, tr_default)
    bands = -(-ho // tr)

    wt = jnp.transpose(w_hwio, (0, 1, 3, 2)).reshape(9, cout, cin)
    wt = wt.astype(jnp.bfloat16)
    bb = b.reshape(cout, 1).astype(jnp.float32)

    in_specs = [
        pl.BlockSpec((1, hin, cin, win), lambda i, j: (i, 0, 0, 0)),
        pl.BlockSpec((9, cout, cin), lambda i, j: (0, 0, 0)),
        pl.BlockSpec((cout, 1), lambda i, j: (0, 0)),
    ]
    args = [x_nhcw.astype(jnp.bfloat16), wt, bb]
    out_c = cout
    flops = 2 * n * ho * wo * 9 * cin * cout
    if head is not None:
        w5, b5 = head
        out_c = w5.shape[-1]                                  # == 1
        wh = w5.reshape(cout, out_c).T.astype(jnp.bfloat16)   # (1, cout)
        bh = b5.reshape(out_c, 1).astype(jnp.float32)
        in_specs += [
            pl.BlockSpec((out_c, cout), lambda i, j: (0, 0)),
            pl.BlockSpec((out_c, 1), lambda i, j: (0, 0)),
        ]
        args += [wh, bh]
        flops += 2 * n * ho * wo * cout * out_c

    out_bytes = n * ho * out_c * wo * jnp.dtype(out_dtype).itemsize
    bytes_accessed = 2 * n * hin * cin * win + out_bytes + 2 * 9 * cin * cout

    return pl.pallas_call(
        _make_conv_kernel(ho, wo, tr, head is not None),
        out_shape=jax.ShapeDtypeStruct((n, ho, out_c, wo), out_dtype),
        grid=(n, bands),
        in_specs=in_specs,
        out_specs=pl.BlockSpec((1, tr, out_c, wo), lambda i, j: (i, j, 0, 0)),
        compiler_params=pltpu.CompilerParams(
            dimension_semantics=("parallel", "parallel"),
            vmem_limit_bytes=_VMEM_LIMIT),
        cost_estimate=pl.CostEstimate(
            flops=int(flops), transcendentals=0,
            bytes_accessed=int(bytes_accessed)),
    )(*args)


# ----------------------------------------------------------------------------
# Glue: nearest-neighbour upsample (lane-dense) and the forward pass
# ----------------------------------------------------------------------------
def _nearest_indices(in_size, out_size):
    # PyTorch nn.Upsample(mode='nearest'): src = floor(dst * in / out).
    return (jnp.arange(out_size) * in_size // out_size).astype(jnp.int32)


def upsample_nearest_2d(x_nhw, out_hw):
    _, h, w = x_nhw.shape
    oh, ow = out_hw
    x = jnp.take(x_nhw, _nearest_indices(h, oh), axis=1)
    return jnp.take(x, _nearest_indices(w, ow), axis=2)


def _upsample_nearest_nhwc(x, out_hw):
    _, h, w, _ = x.shape
    oh, ow = out_hw
    x = jnp.take(x, _nearest_indices(h, oh), axis=1)
    return jnp.take(x, _nearest_indices(w, ow), axis=2)


def mini_unet_forward(x_nchw, params, input_size):
    n, c, h, w = x_nchw.shape
    x = x_nchw.reshape(n, h, 1, w)                       # NCHW (C=1) -> NHCW, free
    x = stem_conv_conv_pool(x, params["w1"], params["b1"],
                            params["w2"], params["b2"])  # (n, Hp, 16, Wp)
    x = conv3x3_nhcw(x, params["w3"], params["b3"])      # (n, H3, 32, W3)
    # conv4 fused with the 1x1 conv5 (+ReLU): a per-pixel conv (+ReLU) commutes
    # bit-exactly with nearest-neighbour upsampling, so it runs BEFORE the
    # upsample and the 64-channel activation never hits HBM.
    x = conv3x3_nhcw(x, params["w4"], params["b4"],
                     head=(params["w5"], params["b5"]),
                     out_dtype=jnp.float32)              # (n, H4, 1, W4) f32
    x = x.reshape(n, x.shape[1], x.shape[3])             # squeeze channel, free
    x = upsample_nearest_2d(x, input_size)               # lane-dense gather
    return x.reshape(n, 1, input_size[0], input_size[1])


def mini_unet_reference(x_nchw, params, input_size):
    """Pure-JAX f32 reference with the exact PyTorch op order."""
    def conv(x, w, b):
        y = lax.conv_general_dilated(
            x, w, (1, 1), "VALID",
            dimension_numbers=("NHWC", "HWIO", "NHWC"))
        return jnp.maximum(y + b, 0.0)

    x = jnp.transpose(x_nchw, (0, 2, 3, 1))
    x = conv(x, params["w1"], params["b1"])
    x = conv(x, params["w2"], params["b2"])
    x = lax.reduce_window(x, -jnp.inf, lax.max,
                          (1, 2, 2, 1), (1, 2, 2, 1), "VALID")
    x = conv(x, params["w3"], params["b3"])
    x = conv(x, params["w4"], params["b4"])
    x = _upsample_nearest_nhwc(x, input_size)            # PyTorch order:
    x = conv(x, params["w5"], params["b5"])              # upsample, then 1x1 + ReLU
    return jnp.transpose(x, (0, 3, 1, 2))


def init_params(key):
    """Deterministic synthetic weights in HWIO layout (== PyTorch OIHW transposed)."""
    ks = jax.random.split(key, 10)

    def wgt(k, shape, fan_in):
        return jax.random.normal(k, shape, jnp.float32) / jnp.sqrt(fan_in)

    return {
        "w1": wgt(ks[0], (3, 3, 1, 8), 9 * 1),
        "b1": 0.01 * jax.random.normal(ks[1], (8,), jnp.float32),
        "w2": wgt(ks[2], (3, 3, 8, 16), 9 * 8),
        "b2": 0.01 * jax.random.normal(ks[3], (16,), jnp.float32),
        "w3": wgt(ks[4], (3, 3, 16, 32), 9 * 16),
        "b3": 0.01 * jax.random.normal(ks[5], (32,), jnp.float32),
        "w4": wgt(ks[6], (3, 3, 32, 64), 9 * 32),
        "b4": 0.01 * jax.random.normal(ks[7], (64,), jnp.float32),
        "w5": wgt(ks[8], (1, 1, 64, 1), 64),
        "b5": 0.01 * jax.random.normal(ks[9], (1,), jnp.float32),
    }


if __name__ == "__main__":
    input_size = (16, 16)                      # small stand-in for (512, 512)
    key = jax.random.PRNGKey(0)
    kx, kp = jax.random.split(key)
    x = jax.random.normal(kx, (2, 1, 16, 16), jnp.float32)   # NCHW, like PyTorch
    params = init_params(kp)

    out = jax.block_until_ready(mini_unet_forward(x, params, input_size))
    ref = jax.block_until_ready(mini_unet_reference(x, params, input_size))

    assert out.shape == (2, 1, 16, 16), out.shape
    # bf16-streamed activations/weights with f32 accumulation vs. the pure-f32
    # reference: allow a few percent of mixed-precision drift.
    err = float(jnp.max(jnp.abs(out - ref)))
    assert jnp.allclose(out, ref, atol=5e-2, rtol=5e-2), err

    print("KERNEL_OK")
</pallas_src>

<mosaic_0001>
module attributes {stable_mosaic.version = 11 : i64} {
  func.func @kernel(%arg0: i32, %arg1: i32, %arg2: memref<1x16x1x16xbf16, #tpu.memory_space<vmem>>, %arg3: memref<9x8x1xf32, #tpu.memory_space<vmem>>, %arg4: memref<8x1xf32, #tpu.memory_space<vmem>>, %arg5: memref<9x16x8xbf16, #tpu.memory_space<vmem>>, %arg6: memref<16x1xf32, #tpu.memory_space<vmem>>, %arg7: memref<1x3x16x12xbf16, #tpu.memory_space<vmem>>) attributes {dimension_semantics = [#tpu.dimension_semantics<parallel>, #tpu.dimension_semantics<parallel>], iteration_bounds = array<i64: 2, 2>, scalar_prefetch = 0 : i64, scratch_operands = 0 : i64, tpu.core_type = #tpu.core_type<tc>, window_params = [{transform_indices = @transform_0, window_bounds = array<i64: 1, 16, 1, 16>}, {pipeline_mode = #tpu.pipeline_mode<synchronous>, transform_indices = @transform_1, window_bounds = array<i64: 9, 8, 1>}, {pipeline_mode = #tpu.pipeline_mode<synchronous>, transform_indices = @transform_2, window_bounds = array<i64: 8, 1>}, {pipeline_mode = #tpu.pipeline_mode<synchronous>, transform_indices = @transform_3, window_bounds = array<i64: 9, 16, 8>}, {pipeline_mode = #tpu.pipeline_mode<synchronous>, transform_indices = @transform_4, window_bounds = array<i64: 16, 1>}, {transform_indices = @transform_5, window_bounds = array<i64: 1, 3, 16, 12>}]} {
    %c0 = arith.constant 0 : index
    %c0_0 = arith.constant 0 : index
    %c0_1 = arith.constant 0 : index
    %0 = vector.load %arg3[%c0, %c0_0, %c0_1] : memref<9x8x1xf32, #tpu.memory_space<vmem>>, vector<9x8x1xf32>
    %c0_2 = arith.constant 0 : index
    %c0_3 = arith.constant 0 : index
    %1 = vector.load %arg4[%c0_2, %c0_3] : memref<8x1xf32, #tpu.memory_space<vmem>>, vector<8x1xf32>
    %c0_4 = arith.constant 0 : index
    %c0_5 = arith.constant 0 : index
    %c0_6 = arith.constant 0 : index
    %2 = vector.load %arg5[%c0_4, %c0_5, %c0_6] : memref<9x16x8xbf16, #tpu.memory_space<vmem>>, vector<9x16x8xbf16>
    %c0_7 = arith.constant 0 : index
    %c0_8 = arith.constant 0 : index
    %3 = vector.load %arg6[%c0_7, %c0_8] : memref<16x1xf32, #tpu.memory_space<vmem>>, vector<16x1xf32>
    %c0_i32 = arith.constant 0 : i32
    %c3_i32 = arith.constant 3 : i32
    %4 = arith.addi %c0_i32, %c3_i32 : i32
    %c1_i32 = arith.constant 1 : i32
    scf.for %arg8 = %c0_i32 to %4 step %c1_i32  : i32 {
      %c3_i32_10 = arith.constant 3 : i32
      %5 = arith.muli %arg1, %c3_i32_10 : i32
      %6 = arith.addi %5, %arg8 : i32
      %c5_i32 = arith.constant 5 : i32
      %7 = arith.minsi %6, %c5_i32 : i32
      %c2_i32 = arith.constant 2 : i32
      %8 = arith.muli %c2_i32, %7 : i32
      %c0_i32_11 = arith.constant 0 : i32
      %9 = arith.addi %8, %c0_i32_11 : i32
      %c0_12 = arith.constant 0 : index
      %10 = arith.index_cast %9 : i32 to index
      %c0_13 = arith.constant 0 : index
      %c0_14 = arith.constant 0 : index
      %11 = vector.load %arg2[%c0_12, %10, %c0_13, %c0_14] : memref<1x16x1x16xbf16, #tpu.memory_space<vmem>>, vector<1x1x1x16xbf16>
      %12 = vector.shape_cast %11 : vector<1x1x1x16xbf16> to vector<1x16xbf16>
      %13 = arith.extf %12 : vector<1x16xbf16> to vector<1x16xf32>
      %c2_i32_15 = arith.constant 2 : i32
      %14 = arith.muli %c2_i32_15, %7 : i32
      %c1_i32_16 = arith.constant 1 : i32
      %15 = arith.addi %14, %c1_i32_16 : i32
      %c0_17 = arith.constant 0 : index
      %16 = arith.index_cast %15 : i32 to index
      %c0_18 = arith.constant 0 : index
      %c0_19 = arith.constant 0 : index
      %17 = vector.load %arg2[%c0_17, %16, %c0_18, %c0_19] : memref<1x16x1x16xbf16, #tpu.memory_space<vmem>>, vector<1x1x1x16xbf16>
      %18 = vector.shape_cast %17 : vector<1x1x1x16xbf16> to vector<1x16xbf16>
      %19 = arith.extf %18 : vector<1x16xbf16> to vector<1x16xf32>
      %c2_i32_20 = arith.constant 2 : i32
      %20 = arith.muli %c2_i32_20, %7 : i32
      %c2_i32_21 = arith.constant 2 : i32
      %21 = arith.addi %20, %c2_i32_21 : i32
      %c0_22 = arith.constant 0 : index
      %22 = arith.index_cast %21 : i32 to index
      %c0_23 = arith.constant 0 : index
      %c0_24 = arith.constant 0 : index
      %23 = vector.load %arg2[%c0_22, %22, %c0_23, %c0_24] : memref<1x16x1x16xbf16, #tpu.memory_space<vmem>>, vector<1x1x1x16xbf16>
      %24 = vector.shape_cast %23 : vector<1x1x1x16xbf16> to vector<1x16xbf16>
      %25 = arith.extf %24 : vector<1x16xbf16> to vector<1x16xf32>
      %c2_i32_25 = arith.constant 2 : i32
      %26 = arith.muli %c2_i32_25, %7 : i32
      %c3_i32_26 = arith.constant 3 : i32
      %27 = arith.addi %26, %c3_i32_26 : i32
      %c0_27 = arith.constant 0 : index
      %28 = arith.index_cast %27 : i32 to index
      %c0_28 = arith.constant 0 : index
      %c0_29 = arith.constant 0 : index
      %29 = vector.load %arg2[%c0_27, %28, %c0_28, %c0_29] : memref<1x16x1x16xbf16, #tpu.memory_space<vmem>>, vector<1x1x1x16xbf16>
      %30 = vector.shape_cast %29 : vector<1x1x1x16xbf16> to vector<1x16xbf16>
      %31 = arith.extf %30 : vector<1x16xbf16> to vector<1x16xf32>
      %c2_i32_30 = arith.constant 2 : i32
      %32 = arith.muli %c2_i32_30, %7 : i32
      %c4_i32 = arith.constant 4 : i32
      %33 = arith.addi %32, %c4_i32 : i32
      %c0_31 = arith.constant 0 : index
      %34 = arith.index_cast %33 : i32 to index
      %c0_32 = arith.constant 0 : index
      %c0_33 = arith.constant 0 : index
      %35 = vector.load %arg2[%c0_31, %34, %c0_32, %c0_33] : memref<1x16x1x16xbf16, #tpu.memory_space<vmem>>, vector<1x1x1x16xbf16>
      %36 = vector.shape_cast %35 : vector<1x1x1x16xbf16> to vector<1x16xbf16>
      %37 = arith.extf %36 : vector<1x16xbf16> to vector<1x16xf32>
      %c2_i32_34 = arith.constant 2 : i32
      %38 = arith.muli %c2_i32_34, %7 : i32
      %c5_i32_35 = arith.constant 5 : i32
      %39 = arith.addi %38, %c5_i32_35 : i32
      %c0_36 = arith.constant 0 : index
      %40 = arith.index_cast %39 : i32 to index
      %c0_37 = arith.constant 0 : index
      %c0_38 = arith.constant 0 : index
      %41 = vector.load %arg2[%c0_36, %40, %c0_37, %c0_38] : memref<1x16x1x16xbf16, #tpu.memory_space<vmem>>, vector<1x1x1x16xbf16>
      %42 = vector.shape_cast %41 : vector<1x1x1x16xbf16> to vector<1x16xbf16>
      %43 = arith.extf %42 : vector<1x16xbf16> to vector<1x16xf32>
      %cst = arith.constant 0.000000e+00 : f32
      %44 = vector.broadcast %cst : f32 to vector<8x14xf32>
      %45 = vector.extract_strided_slice %0 {offsets = [0, 0, 0], sizes = [1, 8, 1], strides = [1, 1, 1]} : vector<9x8x1xf32> to vector<1x8x1xf32>
      %46 = vector.shape_cast %45 : vector<1x8x1xf32> to vector<8x1xf32>
      %47 = vector.extract_strided_slice %13 {offsets = [0, 0], sizes = [1, 14], strides = [1, 1]} : vector<1x16xf32> to vector<1x14xf32>
      %48 = vector.broadcast %46 : vector<8x1xf32> to vector<8x14xf32>
      %49 = vector.broadcast %47 : vector<1x14xf32> to vector<8x14xf32>
      %50 = arith.mulf %48, %49 : vector<8x14xf32>
      %51 = arith.addf %44, %50 : vector<8x14xf32>
      %52 = vector.extract_strided_slice %0 {offsets = [1, 0, 0], sizes = [1, 8, 1], strides = [1, 1, 1]} : vector<9x8x1xf32> to vector<1x8x1xf32>
      %53 = vector.shape_cast %52 : vector<1x8x1xf32> to vector<8x1xf32>
      %54 = vector.extract_strided_slice %13 {offsets = [0, 1], sizes = [1, 14], strides = [1, 1]} : vector<1x16xf32> to vector<1x14xf32>
      %55 = vector.broadcast %53 : vector<8x1xf32> to vector<8x14xf32>
      %56 = vector.broadcast %54 : vector<1x14xf32> to vector<8x14xf32>
      %57 = arith.mulf %55, %56 : vector<8x14xf32>
      %58 = arith.addf %51, %57 : vector<8x14xf32>
      %59 = vector.extract_strided_slice %0 {offsets = [2, 0, 0], sizes = [1, 8, 1], strides = [1, 1, 1]} : vector<9x8x1xf32> to vector<1x8x1xf32>
      %60 = vector.shape_cast %59 : vector<1x8x1xf32> to vector<8x1xf32>
      %61 = vector.extract_strided_slice %13 {offsets = [0, 2], sizes = [1, 14], strides = [1, 1]} : vector<1x16xf32> to vector<1x14xf32>
      %62 = vector.broadcast %60 : vector<8x1xf32> to vector<8x14xf32>
      %63 = vector.broadcast %61 : vector<1x14xf32> to vector<8x14xf32>
      %64 = arith.mulf %62, %63 : vector<8x14xf32>
      %65 = arith.addf %58, %64 : vector<8x14xf32>
      %66 = vector.extract_strided_slice %0 {offsets = [3, 0, 0], sizes = [1, 8, 1], strides = [1, 1, 1]} : vector<9x8x1xf32> to vector<1x8x1xf32>
      %67 = vector.shape_cast %66 : vector<1x8x1xf32> to vector<8x1xf32>
      %68 = vector.extract_strided_slice %19 {offsets = [0, 0], sizes = [1, 14], strides = [1, 1]} : vector<1x16xf32> to vector<1x14xf32>
      %69 = vector.broadcast %67 : vector<8x1xf32> to vector<8x14xf32>
      %70 = vector.broadcast %68 : vector<1x14xf32> to vector<8x14xf32>
      %71 = arith.mulf %69, %70 : vector<8x14xf32>
      %72 = arith.addf %65, %71 : vector<8x14xf32>
      %73 = vector.extract_strided_slice %0 {offsets = [4, 0, 0], sizes = [1, 8, 1], strides = [1, 1, 1]} : vector<9x8x1xf32> to vector<1x8x1xf32>
      %74 = vector.shape_cast %73 : vector<1x8x1xf32> to vector<8x1xf32>
      %75 = vector.extract_strided_slice %19 {offsets = [0, 1], sizes = [1, 14], strides = [1, 1]} : vector<1x16xf32> to vector<1x14xf32>
      %76 = vector.broadcast %74 : vector<8x1xf32> to vector<8x14xf32>
      %77 = vector.broadcast %75 : vector<1x14xf32> to vector<8x14xf32>
      %78 = arith.mulf %76, %77 : vector<8x14xf32>
      %79 = arith.addf %72, %78 : vector<8x14xf32>
      %80 = vector.extract_strided_slice %0 {offsets = [5, 0, 0], sizes = [1, 8, 1], strides = [1, 1, 1]} : vector<9x8x1xf32> to vector<1x8x1xf32>
      %81 = vector.shape_cast %80 : vector<1x8x1xf32> to vector<8x1xf32>
      %82 = vector.extract_strided_slice %19 {offsets = [0, 2], sizes = [1, 14], strides = [1, 1]} : vector<1x16xf32> to vector<1x14xf32>
      %83 = vector.broadcast %81 : vector<8x1xf32> to vector<8x14xf32>
      %84 = vector.broadcast %82 : vector<1x14xf32> to vector<8x14xf32>
      %85 = arith.mulf %83, %84 : vector<8x14xf32>
      %86 = arith.addf %79, %85 : vector<8x14xf32>
      %87 = vector.extract_strided_slice %0 {offsets = [6, 0, 0], sizes = [1, 8, 1], strides = [1, 1, 1]} : vector<9x8x1xf32> to vector<1x8x1xf32>
      %88 = vector.shape_cast %87 : vector<1x8x1xf32> to vector<8x1xf32>
      %89 = vector.extract_strided_slice %25 {offsets = [0, 0], sizes = [1, 14], strides = [1, 1]} : vector<1x16xf32> to vector<1x14xf32>
      %90 = vector.broadcast %88 : vector<8x1xf32> to vector<8x14xf32>
      %91 = vector.broadcast %89 : vector<1x14xf32> to vector<8x14xf32>
      %92 = arith.mulf %90, %91 : vector<8x14xf32>
      %93 = arith.addf %86, %92 : vector<8x14xf32>
      %94 = vector.extract_strided_slice %0 {offsets = [7, 0, 0], sizes = [1, 8, 1], strides = [1, 1, 1]} : vector<9x8x1xf32> to vector<1x8x1xf32>
      %95 = vector.shape_cast %94 : vector<1x8x1xf32> to vector<8x1xf32>
      %96 = vector.extract_strided_slice %25 {offsets = [0, 1], sizes = [1, 14], strides = [1, 1]} : vector<1x16xf32> to vector<1x14xf32>
      %97 = vector.broadcast %95 : vector<8x1xf32> to vector<8x14xf32>
      %98 = vector.broadcast %96 : vector<1x14xf32> to vector<8x14xf32>
      %99 = arith.mulf %97, %98 : vector<8x14xf32>
      %100 = arith.addf %93, %99 : vector<8x14xf32>
      %101 = vector.extract_strided_slice %0 {offsets = [8, 0, 0], sizes = [1, 8, 1], strides = [1, 1, 1]} : vector<9x8x1xf32> to vector<1x8x1xf32>
      %102 = vector.shape_cast %101 : vector<1x8x1xf32> to vector<8x1xf32>
      %103 = vector.extract_strided_slice %25 {offsets = [0, 2], sizes = [1, 14], strides = [1, 1]} : vector<1x16xf32> to vector<1x14xf32>
      %104 = vector.broadcast %102 : vector<8x1xf32> to vector<8x14xf32>
      %105 = vector.broadcast %103 : vector<1x14xf32> to vector<8x14xf32>
      %106 = arith.mulf %104, %105 : vector<8x14xf32>
      %107 = arith.addf %100, %106 : vector<8x14xf32>
      %108 = vector.broadcast %1 : vector<8x1xf32> to vector<8x14xf32>
      %109 = arith.addf %107, %108 : vector<8x14xf32>
      %cst_39 = arith.constant 0.000000e+00 : f32
      %110 = vector.broadcast %cst_39 : f32 to vector<8x14xf32>
      %111 = arith.maximumf %109, %110 : vector<8x14xf32>
      %112 = arith.truncf %111 : vector<8x14xf32> to vector<8x14xbf16>
      %cst_40 = arith.constant 0.000000e+00 : f32
      %113 = vector.broadcast %cst_40 : f32 to vector<8x14xf32>
      %114 = vector.extract_strided_slice %0 {offsets = [0, 0, 0], sizes = [1, 8, 1], strides = [1, 1, 1]} : vector<9x8x1xf32> to vector<1x8x1xf32>
      %115 = vector.shape_cast %114 : vector<1x8x1xf32> to vector<8x1xf32>
      %116 = vector.extract_strided_slice %19 {offsets = [0, 0], sizes = [1, 14], strides = [1, 1]} : vector<1x16xf32> to vector<1x14xf32>
      %117 = vector.broadcast %115 : vector<8x1xf32> to vector<8x14xf32>
      %118 = vector.broadcast %116 : vector<1x14xf32> to vector<8x14xf32>
      %119 = arith.mulf %117, %118 : vector<8x14xf32>
      %120 = arith.addf %113, %119 : vector<8x14xf32>
      %121 = vector.extract_strided_slice %0 {offsets = [1, 0, 0], sizes = [1, 8, 1], strides = [1, 1, 1]} : vector<9x8x1xf32> to vector<1x8x1xf32>
      %122 = vector.shape_cast %121 : vector<1x8x1xf32> to vector<8x1xf32>
      %123 = vector.extract_strided_slice %19 {offsets = [0, 1], sizes = [1, 14], strides = [1, 1]} : vector<1x16xf32> to vector<1x14xf32>
      %124 = vector.broadcast %122 : vector<8x1xf32> to vector<8x14xf32>
      %125 = vector.broadcast %123 : vector<1x14xf32> to vector<8x14xf32>
      %126 = arith.mulf %124, %125 : vector<8x14xf32>
      %127 = arith.addf %120, %126 : vector<8x14xf32>
      %128 = vector.extract_strided_slice %0 {offsets = [2, 0, 0], sizes = [1, 8, 1], strides = [1, 1, 1]} : vector<9x8x1xf32> to vector<1x8x1xf32>
      %129 = vector.shape_cast %128 : vector<1x8x1xf32> to vector<8x1xf32>
      %130 = vector.extract_strided_slice %19 {offsets = [0, 2], sizes = [1, 14], strides = [1, 1]} : vector<1x16xf32> to vector<1x14xf32>
      %131 = vector.broadcast %129 : vector<8x1xf32> to vector<8x14xf32>
      %132 = vector.broadcast %130 : vector<1x14xf32> to vector<8x14xf32>
      %133 = arith.mulf %131, %132 : vector<8x14xf32>
      %134 = arith.addf %127, %133 : vector<8x14xf32>
      %135 = vector.extract_strided_slice %0 {offsets = [3, 0, 0], sizes = [1, 8, 1], strides = [1, 1, 1]} : vector<9x8x1xf32> to vector<1x8x1xf32>
      %136 = vector.shape_cast %135 : vector<1x8x1xf32> to vector<8x1xf32>
      %137 = vector.extract_strided_slice %25 {offsets = [0, 0], sizes = [1, 14], strides = [1, 1]} : vector<1x16xf32> to vector<1x14xf32>
      %138 = vector.broadcast %136 : vector<8x1xf32> to vector<8x14xf32>
      %139 = vector.broadcast %137 : vector<1x14xf32> to vector<8x14xf32>
      %140 = arith.mulf %138, %139 : vector<8x14xf32>
      %141 = arith.addf %134, %140 : vector<8x14xf32>
      %142 = vector.extract_strided_slice %0 {offsets = [4, 0, 0], sizes = [1, 8, 1], strides = [1, 1, 1]} : vector<9x8x1xf32> to vector<1x8x1xf32>
      %143 = vector.shape_cast %142 : vector<1x8x1xf32> to vector<8x1xf32>
      %144 = vector.extract_strided_slice %25 {offsets = [0, 1], sizes = [1, 14], strides = [1, 1]} : vector<1x16xf32> to vector<1x14xf32>
      %145 = vector.broadcast %143 : vector<8x1xf32> to vector<8x14xf32>
      %146 = vector.broadcast %144 : vector<1x14xf32> to vector<8x14xf32>
      %147 = arith.mulf %145, %146 : vector<8x14xf32>
      %148 = arith.addf %141, %147 : vector<8x14xf32>
      %149 = vector.extract_strided_slice %0 {offsets = [5, 0, 0], sizes = [1, 8, 1], strides = [1, 1, 1]} : vector<9x8x1xf32> to vector<1x8x1xf32>
      %150 = vector.shape_cast %149 : vector<1x8x1xf32> to vector<8x1xf32>
      %151 = vector.extract_strided_slice %25 {offsets = [0, 2], sizes = [1, 14], strides = [1, 1]} : vector<1x16xf32> to vector<1x14xf32>
      %152 = vector.broadcast %150 : vector<8x1xf32> to vector<8x14xf32>
      %153 = vector.broadcast %151 : vector<1x14xf32> to vector<8x14xf32>
      %154 = arith.mulf %152, %153 : vector<8x14xf32>
      %155 = arith.addf %148, %154 : vector<8x14xf32>
      %156 = vector.extract_strided_slice %0 {offsets = [6, 0, 0], sizes = [1, 8, 1], strides = [1, 1, 1]} : vector<9x8x1xf32> to vector<1x8x1xf32>
      %157 = vector.shape_cast %156 : vector<1x8x1xf32> to vector<8x1xf32>
      %158 = vector.extract_strided_slice %31 {offsets = [0, 0], sizes = [1, 14], strides = [1, 1]} : vector<1x16xf32> to vector<1x14xf32>
      %159 = vector.broadcast %157 : vector<8x1xf32> to vector<8x14xf32>
      %160 = vector.broadcast %158 : vector<1x14xf32> to vector<8x14xf32>
      %161 = arith.mulf %159, %160 : vector<8x14xf32>
      %162 = arith.addf %155, %161 : vector<8x14xf32>
      %163 = vector.extract_strided_slice %0 {offsets = [7, 0, 0], sizes = [1, 8, 1], strides = [1, 1, 1]} : vector<9x8x1xf32> to vector<1x8x1xf32>
      %164 = vector.shape_cast %163 : vector<1x8x1xf32> to vector<8x1xf32>
      %165 = vector.extract_strided_slice %31 {offsets = [0, 1], sizes = [1, 14], strides = [1, 1]} : vector<1x16xf32> to vector<1x14xf32>
      %166 = vector.broadcast %164 : vector<8x1xf32> to vector<8x14xf32>
      %167 = vector.broadcast %165 : vector<1x14xf32> to vector<8x14xf32>
      %168 = arith.mulf %166, %167 : vector<8x14xf32>
      %169 = arith.addf %162, %168 : vector<8x14xf32>
      %170 = vector.extract_strided_slice %0 {offsets = [8, 0, 0], sizes = [1, 8, 1], strides = [1, 1, 1]} : vector<9x8x1xf32> to vector<1x8x1xf32>
      %171 = vector.shape_cast %170 : vector<1x8x1xf32> to vector<8x1xf32>
      %172 = vector.extract_strided_slice %31 {offsets = [0, 2], sizes = [1, 14], strides = [1, 1]} : vector<1x16xf32> to vector<1x14xf32>
      %173 = vector.broadcast %171 : vector<8x1xf32> to vector<8x14xf32>
      %174 = vector.broadcast %172 : vector<1x14xf32> to vector<8x14xf32>
      %175 = arith.mulf %173, %174 : vector<8x14xf32>
      %176 = arith.addf %169, %175 : vector<8x14xf32>
      %177 = vector.broadcast %1 : vector<8x1xf32> to vector<8x14xf32>
      %178 = arith.addf %176, %177 : vector<8x14xf32>
      %cst_41 = arith.constant 0.000000e+00 : f32
      %179 = vector.broadcast %cst_41 : f32 to vector<8x14xf32>
      %180 = arith.maximumf %178, %179 : vector<8x14xf32>
      %181 = arith.truncf %180 : vector<8x14xf32> to vector<8x14xbf16>
      %cst_42 = arith.constant 0.000000e+00 : f32
      %182 = vector.broadcast %cst_42 : f32 to vector<8x14xf32>
      %183 = vector.extract_strided_slice %0 {offsets = [0, 0, 0], sizes = [1, 8, 1], strides = [1, 1, 1]} : vector<9x8x1xf32> to vector<1x8x1xf32>
      %184 = vector.shape_cast %183 : vector<1x8x1xf32> to vector<8x1xf32>
      %185 = vector.extract_strided_slice %25 {offsets = [0, 0], sizes = [1, 14], strides = [1, 1]} : vector<1x16xf32> to vector<1x14xf32>
      %186 = vector.broadcast %184 : vector<8x1xf32> to vector<8x14xf32>
      %187 = vector.broadcast %185 : vector<1x14xf32> to vector<8x14xf32>
      %188 = arith.mulf %186, %187 : vector<8x14xf32>
      %189 = arith.addf %182, %188 : vector<8x14xf32>
      %190 = vector.extract_strided_slice %0 {offsets = [1, 0, 0], sizes = [1, 8, 1], strides = [1, 1, 1]} : vector<9x8x1xf32> to vector<1x8x1xf32>
      %191 = vector.shape_cast %190 : vector<1x8x1xf32> to vector<8x1xf32>
      %192 = vector.extract_strided_slice %25 {offsets = [0, 1], sizes = [1, 14], strides = [1, 1]} : vector<1x16xf32> to vector<1x14xf32>
      %193 = vector.broadcast %191 : vector<8x1xf32> to vector<8x14xf32>
      %194 = vector.broadcast %192 : vector<1x14xf32> to vector<8x14xf32>
      %195 = arith.mulf %193, %194 : vector<8x14xf32>
      %196 = arith.addf %189, %195 : vector<8x14xf32>
      %197 = vector.extract_strided_slice %0 {offsets = [2, 0, 0], sizes = [1, 8, 1], strides = [1, 1, 1]} : vector<9x8x1xf32> to vector<1x8x1xf32>
      %198 = vector.shape_cast %197 : vector<1x8x1xf32> to vector<8x1xf32>
      %199 = vector.extract_strided_slice %25 {offsets = [0, 2], sizes = [1, 14], strides = [1, 1]} : vector<1x16xf32> to vector<1x14xf32>
      %200 = vector.broadcast %198 : vector<8x1xf32> to vector<8x14xf32>
      %201 = vector.broadcast %199 : vector<1x14xf32> to vector<8x14xf32>
      %202 = arith.mulf %200, %201 : vector<8x14xf32>
      %203 = arith.addf %196, %202 : vector<8x14xf32>
      %204 = vector.extract_strided_slice %0 {offsets = [3, 0, 0], sizes = [1, 8, 1], strides = [1, 1, 1]} : vector<9x8x1xf32> to vector<1x8x1xf32>
      %205 = vector.shape_cast %204 : vector<1x8x1xf32> to vector<8x1xf32>
      %206 = vector.extract_strided_slice %31 {offsets = [0, 0], sizes = [1, 14], strides = [1, 1]} : vector<1x16xf32> to vector<1x14xf32>
      %207 = vector.broadcast %205 : vector<8x1xf32> to vector<8x14xf32>
      %208 = vector.broadcast %206 : vector<1x14xf32> to vector<8x14xf32>
      %209 = arith.mulf %207, %208 : vector<8x14xf32>
      %210 = arith.addf %203, %209 : vector<8x14xf32>
      %211 = vector.extract_strided_slice %0 {offsets = [4, 0, 0], sizes = [1, 8, 1], strides = [1, 1, 1]} : vector<9x8x1xf32> to vector<1x8x1xf32>
      %212 = vector.shape_cast %211 : vector<1x8x1xf32> to vector<8x1xf32>
      %213 = vector.extract_strided_slice %31 {offsets = [0, 1], sizes = [1, 14], strides = [1, 1]} : vector<1x16xf32> to vector<1x14xf32>
      %214 = vector.broadcast %212 : vector<8x1xf32> to vector<8x14xf32>
      %215 = vector.broadcast %213 : vector<1x14xf32> to vector<8x14xf32>
      %216 = arith.mulf %214, %215 : vector<8x14xf32>
      %217 = arith.addf %210, %216 : vector<8x14xf32>
      %218 = vector.extract_strided_slice %0 {offsets = [5, 0, 0], sizes = [1, 8, 1], strides = [1, 1, 1]} : vector<9x8x1xf32> to vector<1x8x1xf32>
      %219 = vector.shape_cast %218 : vector<1x8x1xf32> to vector<8x1xf32>
      %220 = vector.extract_strided_slice %31 {offsets = [0, 2], sizes = [1, 14], strides = [1, 1]} : vector<1x16xf32> to vector<1x14xf32>
      %221 = vector.broadcast %219 : vector<8x1xf32> to vector<8x14xf32>
      %222 = vector.broadcast %220 : vector<1x14xf32> to vector<8x14xf32>
      %223 = arith.mulf %221, %222 : vector<8x14xf32>
      %224 = arith.addf %217, %223 : vector<8x14xf32>
      %225 = vector.extract_strided_slice %0 {offsets = [6, 0, 0], sizes = [1, 8, 1], strides = [1, 1, 1]} : vector<9x8x1xf32> to vector<1x8x1xf32>
      %226 = vector.shape_cast %225 : vector<1x8x1xf32> to vector<8x1xf32>
      %227 = vector.extract_strided_slice %37 {offsets = [0, 0], sizes = [1, 14], strides = [1, 1]} : vector<1x16xf32> to vector<1x14xf32>
      %228 = vector.broadcast %226 : vector<8x1xf32> to vector<8x14xf32>
      %229 = vector.broadcast %227 : vector<1x14xf32> to vector<8x14xf32>
      %230 = arith.mulf %228, %229 : vector<8x14xf32>
      %231 = arith.addf %224, %230 : vector<8x14xf32>
      %232 = vector.extract_strided_slice %0 {offsets = [7, 0, 0], sizes = [1, 8, 1], strides = [1, 1, 1]} : vector<9x8x1xf32> to vector<1x8x1xf32>
      %233 = vector.shape_cast %232 : vector<1x8x1xf32> to vector<8x1xf32>
      %234 = vector.extract_strided_slice %37 {offsets = [0, 1], sizes = [1, 14], strides = [1, 1]} : vector<1x16xf32> to vector<1x14xf32>
      %235 = vector.broadcast %233 : vector<8x1xf32> to vector<8x14xf32>
      %236 = vector.broadcast %234 : vector<1x14xf32> to vector<8x14xf32>
      %237 = arith.mulf %235, %236 : vector<8x14xf32>
      %238 = arith.addf %231, %237 : vector<8x14xf32>
      %239 = vector.extract_strided_slice %0 {offsets = [8, 0, 0], sizes = [1, 8, 1], strides = [1, 1, 1]} : vector<9x8x1xf32> to vector<1x8x1xf32>
      %240 = vector.shape_cast %239 : vector<1x8x1xf32> to vector<8x1xf32>
      %241 = vector.extract_strided_slice %37 {offsets = [0, 2], sizes = [1, 14], strides = [1, 1]} : vector<1x16xf32> to vector<1x14xf32>
      %242 = vector.broadcast %240 : vector<8x1xf32> to vector<8x14xf32>
      %243 = vector.broadcast %241 : vector<1x14xf32> to vector<8x14xf32>
      %244 = arith.mulf %242, %243 : vector<8x14xf32>
      %245 = arith.addf %238, %244 : vector<8x14xf32>
      %246 = vector.broadcast %1 : vector<8x1xf32> to vector<8x14xf32>
      %247 = arith.addf %245, %246 : vector<8x14xf32>
      %cst_43 = arith.constant 0.000000e+00 : f32
      %248 = vector.broadcast %cst_43 : f32 to vector<8x14xf32>
      %249 = arith.maximumf %247, %248 : vector<8x14xf32>
      %250 = arith.truncf %249 : vector<8x14xf32> to vector<8x14xbf16>
      %cst_44 = arith.constant 0.000000e+00 : f32
      %251 = vector.broadcast %cst_44 : f32 to vector<8x14xf32>
      %252 = vector.extract_strided_slice %0 {offsets = [0, 0, 0], sizes = [1, 8, 1], strides = [1, 1, 1]} : vector<9x8x1xf32> to vector<1x8x1xf32>
      %253 = vector.shape_cast %252 : vector<1x8x1xf32> to vector<8x1xf32>
      %254 = vector.extract_strided_slice %31 {offsets = [0, 0], sizes = [1, 14], strides = [1, 1]} : vector<1x16xf32> to vector<1x14xf32>
      %255 = vector.broadcast %253 : vector<8x1xf32> to vector<8x14xf32>
      %256 = vector.broadcast %254 : vector<1x14xf32> to vector<8x14xf32>
      %257 = arith.mulf %255, %256 : vector<8x14xf32>
      %258 = arith.addf %251, %257 : vector<8x14xf32>
      %259 = vector.extract_strided_slice %0 {offsets = [1, 0, 0], sizes = [1, 8, 1], strides = [1, 1, 1]} : vector<9x8x1xf32> to vector<1x8x1xf32>
      %260 = vector.shape_cast %259 : vector<1x8x1xf32> to vector<8x1xf32>
      %261 = vector.extract_strided_slice %31 {offsets = [0, 1], sizes = [1, 14], strides = [1, 1]} : vector<1x16xf32> to vector<1x14xf32>
      %262 = vector.broadcast %260 : vector<8x1xf32> to vector<8x14xf32>
      %263 = vector.broadcast %261 : vector<1x14xf32> to vector<8x14xf32>
      %264 = arith.mulf %262, %263 : vector<8x14xf32>
      %265 = arith.addf %258, %264 : vector<8x14xf32>
      %266 = vector.extract_strided_slice %0 {offsets = [2, 0, 0], sizes = [1, 8, 1], strides = [1, 1, 1]} : vector<9x8x1xf32> to vector<1x8x1xf32>
      %267 = vector.shape_cast %266 : vector<1x8x1xf32> to vector<8x1xf32>
      %268 = vector.extract_strided_slice %31 {offsets = [0, 2], sizes = [1, 14], strides = [1, 1]} : vector<1x16xf32> to vector<1x14xf32>
      %269 = vector.broadcast %267 : vector<8x1xf32> to vector<8x14xf32>
      %270 = vector.broadcast %268 : vector<1x14xf32> to vector<8x14xf32>
      %271 = arith.mulf %269, %270 : vector<8x14xf32>
      %272 = arith.addf %265, %271 : vector<8x14xf32>
      %273 = vector.extract_strided_slice %0 {offsets = [3, 0, 0], sizes = [1, 8, 1], strides = [1, 1, 1]} : vector<9x8x1xf32> to vector<1x8x1xf32>
      %274 = vector.shape_cast %273 : vector<1x8x1xf32> to vector<8x1xf32>
      %275 = vector.extract_strided_slice %37 {offsets = [0, 0], sizes = [1, 14], strides = [1, 1]} : vector<1x16xf32> to vector<1x14xf32>
      %276 = vector.broadcast %274 : vector<8x1xf32> to vector<8x14xf32>
      %277 = vector.broadcast %275 : vector<1x14xf32> to vector<8x14xf32>
      %278 = arith.mulf %276, %277 : vector<8x14xf32>
      %279 = arith.addf %272, %278 : vector<8x14xf32>
      %280 = vector.extract_strided_slice %0 {offsets = [4, 0, 0], sizes = [1, 8, 1], strides = [1, 1, 1]} : vector<9x8x1xf32> to vector<1x8x1xf32>
      %281 = vector.shape_cast %280 : vector<1x8x1xf32> to vector<8x1xf32>
      %282 = vector.extract_strided_slice %37 {offsets = [0, 1], sizes = [1, 14], strides = [1, 1]} : vector<1x16xf32> to vector<1x14xf32>
      %283 = vector.broadcast %281 : vector<8x1xf32> to vector<8x14xf32>
      %284 = vector.broadcast %282 : vector<1x14xf32> to vector<8x14xf32>
      %285 = arith.mulf %283, %284 : vector<8x14xf32>
      %286 = arith.addf %279, %285 : vector<8x14xf32>
      %287 = vector.extract_strided_slice %0 {offsets = [5, 0, 0], sizes = [1, 8, 1], strides = [1, 1, 1]} : vector<9x8x1xf32> to vector<1x8x1xf32>
      %288 = vector.shape_cast %287 : vector<1x8x1xf32> to vector<8x1xf32>
      %289 = vector.extract_strided_slice %37 {offsets = [0, 2], sizes = [1, 14], strides = [1, 1]} : vector<1x16xf32> to vector<1x14xf32>
      %290 = vector.broadcast %288 : vector<8x1xf32> to vector<8x14xf32>
      %291 = vector.broadcast %289 : vector<1x14xf32> to vector<8x14xf32>
      %292 = arith.mulf %290, %291 : vector<8x14xf32>
      %293 = arith.addf %286, %292 : vector<8x14xf32>
      %294 = vector.extract_strided_slice %0 {offsets = [6, 0, 0], sizes = [1, 8, 1], strides = [1, 1, 1]} : vector<9x8x1xf32> to vector<1x8x1xf32>
      %295 = vector.shape_cast %294 : vector<1x8x1xf32> to vector<8x1xf32>
      %296 = vector.extract_strided_slice %43 {offsets = [0, 0], sizes = [1, 14], strides = [1, 1]} : vector<1x16xf32> to vector<1x14xf32>
      %297 = vector.broadcast %295 : vector<8x1xf32> to vector<8x14xf32>
      %298 = vector.broadcast %296 : vector<1x14xf32> to vector<8x14xf32>
      %299 = arith.mulf %297, %298 : vector<8x14xf32>
      %300 = arith.addf %293, %299 : vector<8x14xf32>
      %301 = vector.extract_strided_slice %0 {offsets = [7, 0, 0], sizes = [1, 8, 1], strides = [1, 1, 1]} : vector<9x8x1xf32> to vector<1x8x1xf32>
      %302 = vector.shape_cast %301 : vector<1x8x1xf32> to vector<8x1xf32>
      %303 = vector.extract_strided_slice %43 {offsets = [0, 1], sizes = [1, 14], strides = [1, 1]} : vector<1x16xf32> to vector<1x14xf32>
      %304 = vector.broadcast %302 : vector<8x1xf32> to vector<8x14xf32>
      %305 = vector.broadcast %303 : vector<1x14xf32> to vector<8x14xf32>
      %306 = arith.mulf %304, %305 : vector<8x14xf32>
      %307 = arith.addf %300, %306 : vector<8x14xf32>
      %308 = vector.extract_strided_slice %0 {offsets = [8, 0, 0], sizes = [1, 8, 1], strides = [1, 1, 1]} : vector<9x8x1xf32> to vector<1x8x1xf32>
      %309 = vector.shape_cast %308 : vector<1x8x1xf32> to vector<8x1xf32>
      %310 = vector.extract_strided_slice %43 {offsets = [0, 2], sizes = [1, 14], strides = [1, 1]} : vector<1x16xf32> to vector<1x14xf32>
      %311 = vector.broadcast %309 : vector<8x1xf32> to vector<8x14xf32>
      %312 = vector.broadcast %310 : vector<1x14xf32> to vector<8x14xf32>
      %313 = arith.mulf %311, %312 : vector<8x14xf32>
      %314 = arith.addf %307, %313 : vector<8x14xf32>
      %315 = vector.broadcast %1 : vector<8x1xf32> to vector<8x14xf32>
      %316 = arith.addf %314, %315 : vector<8x14xf32>
      %cst_45 = arith.constant 0.000000e+00 : f32
      %317 = vector.broadcast %cst_45 : f32 to vector<8x14xf32>
      %318 = arith.maximumf %316, %317 : vector<8x14xf32>
      %319 = arith.truncf %318 : vector<8x14xf32> to vector<8x14xbf16>
      %cst_46 = arith.constant 0.000000e+00 : f32
      %320 = vector.broadcast %cst_46 : f32 to vector<16x12xf32>
      %321 = vector.extract_strided_slice %2 {offsets = [0, 0, 0], sizes = [1, 16, 8], strides = [1, 1, 1]} : vector<9x16x8xbf16> to vector<1x16x8xbf16>
      %322 = vector.shape_cast %321 : vector<1x16x8xbf16> to vector<16x8xbf16>
      %323 = vector.extract_strided_slice %112 {offsets = [0, 0], sizes = [8, 12], strides = [1, 1]} : vector<8x14xbf16> to vector<8x12xbf16>
      %cst_47 = arith.constant dense<0.000000e+00> : vector<16x12xf32>
      %324 = tpu.matmul %322, %323, %cst_47 {dimension_numbers = #tpu.dot_dimension_numbers<[1], [0], [0], [1], [0, 0, 1, 1], [], []>} : vector<16x8xbf16>, vector<8x12xbf16>, vector<16x12xf32> -> vector<16x12xf32>
      %325 = arith.addf %320, %324 : vector<16x12xf32>
      %326 = vector.extract_strided_slice %2 {offsets = [1, 0, 0], sizes = [1, 16, 8], strides = [1, 1, 1]} : vector<9x16x8xbf16> to vector<1x16x8xbf16>
      %327 = vector.shape_cast %326 : vector<1x16x8xbf16> to vector<16x8xbf16>
      %328 = vector.extract_strided_slice %112 {offsets = [0, 1], sizes = [8, 12], strides = [1, 1]} : vector<8x14xbf16> to vector<8x12xbf16>
      %cst_48 = arith.constant dense<0.000000e+00> : vector<16x12xf32>
      %329 = tpu.matmul %327, %328, %cst_48 {dimension_numbers = #tpu.dot_dimension_numbers<[1], [0], [0], [1], [0, 0, 1, 1], [], []>} : vector<16x8xbf16>, vector<8x12xbf16>, vector<16x12xf32> -> vector<16x12xf32>
      %330 = arith.addf %325, %329 : vector<16x12xf32>
      %331 = vector.extract_strided_slice %2 {offsets = [2, 0, 0], sizes = [1, 16, 8], strides = [1, 1, 1]} : vector<9x16x8xbf16> to vector<1x16x8xbf16>
      %332 = vector.shape_cast %331 : vector<1x16x8xbf16> to vector<16x8xbf16>
      %333 = vector.extract_strided_slice %112 {offsets = [0, 2], sizes = [8, 12], strides = [1, 1]} : vector<8x14xbf16> to vector<8x12xbf16>
      %cst_49 = arith.constant dense<0.000000e+00> : vector<16x12xf32>
      %334 = tpu.matmul %332, %333, %cst_49 {dimension_numbers = #tpu.dot_dimension_numbers<[1], [0], [0], [1], [0, 0, 1, 1], [], []>} : vector<16x8xbf16>, vector<8x12xbf16>, vector<16x12xf32> -> vector<16x12xf32>
      %335 = arith.addf %330, %334 : vector<16x12xf32>
      %336 = vector.extract_strided_slice %2 {offsets = [3, 0, 0], sizes = [1, 16, 8], strides = [1, 1, 1]} : vector<9x16x8xbf16> to vector<1x16x8xbf16>
      %337 = vector.shape_cast %336 : vector<1x16x8xbf16> to vector<16x8xbf16>
      %338 = vector.extract_strided_slice %181 {offsets = [0, 0], sizes = [8, 12], strides = [1, 1]} : vector<8x14xbf16> to vector<8x12xbf16>
      %cst_50 = arith.constant dense<0.000000e+00> : vector<16x12xf32>
      %339 = tpu.matmul %337, %338, %cst_50 {dimension_numbers = #tpu.dot_dimension_numbers<[1], [0], [0], [1], [0, 0, 1, 1], [], []>} : vector<16x8xbf16>, vector<8x12xbf16>, vector<16x12xf32> -> vector<16x12xf32>
      %340 = arith.addf %335, %339 : vector<16x12xf32>
      %341 = vector.extract_strided_slice %2 {offsets = [4, 0, 0], sizes = [1, 16, 8], strides = [1, 1, 1]} : vector<9x16x8xbf16> to vector<1x16x8xbf16>
      %342 = vector.shape_cast %341 : vector<1x16x8xbf16> to vector<16x8xbf16>
      %343 = vector.extract_strided_slice %181 {offsets = [0, 1], sizes = [8, 12], strides = [1, 1]} : vector<8x14xbf16> to vector<8x12xbf16>
      %cst_51 = arith.constant dense<0.000000e+00> : vector<16x12xf32>
      %344 = tpu.matmul %342, %343, %cst_51 {dimension_numbers = #tpu.dot_dimension_numbers<[1], [0], [0], [1], [0, 0, 1, 1], [], []>} : vector<16x8xbf16>, vector<8x12xbf16>, vector<16x12xf32> -> vector<16x12xf32>
      %345 = arith.addf %340, %344 : vector<16x12xf32>
      %346 = vector.extract_strided_slice %2 {offsets = [5, 0, 0], sizes = [1, 16, 8], strides = [1, 1, 1]} : vector<9x16x8xbf16> to vector<1x16x8xbf16>
      %347 = vector.shape_cast %346 : vector<1x16x8xbf16> to vector<16x8xbf16>
      %348 = vector.extract_strided_slice %181 {offsets = [0, 2], sizes = [8, 12], strides = [1, 1]} : vector<8x14xbf16> to vector<8x12xbf16>
      %cst_52 = arith.constant dense<0.000000e+00> : vector<16x12xf32>
      %349 = tpu.matmul %347, %348, %cst_52 {dimension_numbers = #tpu.dot_dimension_numbers<[1], [0], [0], [1], [0, 0, 1, 1], [], []>} : vector<16x8xbf16>, vector<8x12xbf16>, vector<16x12xf32> -> vector<16x12xf32>
      %350 = arith.addf %345, %349 : vector<16x12xf32>
      %351 = vector.extract_strided_slice %2 {offsets = [6, 0, 0], sizes = [1, 16, 8], strides = [1, 1, 1]} : vector<9x16x8xbf16> to vector<1x16x8xbf16>
      %352 = vector.shape_cast %351 : vector<1x16x8xbf16> to vector<16x8xbf16>
      %353 = vector.extract_strided_slice %250 {offsets = [0, 0], sizes = [8, 12], strides = [1, 1]} : vector<8x14xbf16> to vector<8x12xbf16>
      %cst_53 = arith.constant dense<0.000000e+00> : vector<16x12xf32>
      %354 = tpu.matmul %352, %353, %cst_53 {dimension_numbers = #tpu.dot_dimension_numbers<[1], [0], [0], [1], [0, 0, 1, 1], [], []>} : vector<16x8xbf16>, vector<8x12xbf16>, vector<16x12xf32> -> vector<16x12xf32>
      %355 = arith.addf %350, %354 : vector<16x12xf32>
      %356 = vector.extract_strided_slice %2 {offsets = [7, 0, 0], sizes = [1, 16, 8], strides = [1, 1, 1]} : vector<9x16x8xbf16> to vector<1x16x8xbf16>
      %357 = vector.shape_cast %356 : vector<1x16x8xbf16> to vector<16x8xbf16>
      %358 = vector.extract_strided_slice %250 {offsets = [0, 1], sizes = [8, 12], strides = [1, 1]} : vector<8x14xbf16> to vector<8x12xbf16>
      %cst_54 = arith.constant dense<0.000000e+00> : vector<16x12xf32>
      %359 = tpu.matmul %357, %358, %cst_54 {dimension_numbers = #tpu.dot_dimension_numbers<[1], [0], [0], [1], [0, 0, 1, 1], [], []>} : vector<16x8xbf16>, vector<8x12xbf16>, vector<16x12xf32> -> vector<16x12xf32>
      %360 = arith.addf %355, %359 : vector<16x12xf32>
      %361 = vector.extract_strided_slice %2 {offsets = [8, 0, 0], sizes = [1, 16, 8], strides = [1, 1, 1]} : vector<9x16x8xbf16> to vector<1x16x8xbf16>
      %362 = vector.shape_cast %361 : vector<1x16x8xbf16> to vector<16x8xbf16>
      %363 = vector.extract_strided_slice %250 {offsets = [0, 2], sizes = [8, 12], strides = [1, 1]} : vector<8x14xbf16> to vector<8x12xbf16>
      %cst_55 = arith.constant dense<0.000000e+00> : vector<16x12xf32>
      %364 = tpu.matmul %362, %363, %cst_55 {dimension_numbers = #tpu.dot_dimension_numbers<[1], [0], [0], [1], [0, 0, 1, 1], [], []>} : vector<16x8xbf16>, vector<8x12xbf16>, vector<16x12xf32> -> vector<16x12xf32>
      %365 = arith.addf %360, %364 : vector<16x12xf32>
      %366 = vector.broadcast %3 : vector<16x1xf32> to vector<16x12xf32>
      %367 = arith.addf %365, %366 : vector<16x12xf32>
      %cst_56 = arith.constant 0.000000e+00 : f32
      %368 = vector.broadcast %cst_56 : f32 to vector<16x12xf32>
      %369 = arith.maximumf %367, %368 : vector<16x12xf32>
      %cst_57 = arith.constant 0.000000e+00 : f32
      %370 = vector.broadcast %cst_57 : f32 to vector<16x12xf32>
      %371 = vector.extract_strided_slice %2 {offsets = [0, 0, 0], sizes = [1, 16, 8], strides = [1, 1, 1]} : vector<9x16x8xbf16> to vector<1x16x8xbf16>
      %372 = vector.shape_cast %371 : vector<1x16x8xbf16> to vector<16x8xbf16>
      %373 = vector.extract_strided_slice %181 {offsets = [0, 0], sizes = [8, 12], strides = [1, 1]} : vector<8x14xbf16> to vector<8x12xbf16>
      %cst_58 = arith.constant dense<0.000000e+00> : vector<16x12xf32>
      %374 = tpu.matmul %372, %373, %cst_58 {dimension_numbers = #tpu.dot_dimension_numbers<[1], [0], [0], [1], [0, 0, 1, 1], [], []>} : vector<16x8xbf16>, vector<8x12xbf16>, vector<16x12xf32> -> vector<16x12xf32>
      %375 = arith.addf %370, %374 : vector<16x12xf32>
      %376 = vector.extract_strided_slice %2 {offsets = [1, 0, 0], sizes = [1, 16, 8], strides = [1, 1, 1]} : vector<9x16x8xbf16> to vector<1x16x8xbf16>
      %377 = vector.shape_cast %376 : vector<1x16x8xbf16> to vector<16x8xbf16>
      %378 = vector.extract_strided_slice %181 {offsets = [0, 1], sizes = [8, 12], strides = [1, 1]} : vector<8x14xbf16> to vector<8x12xbf16>
      %cst_59 = arith.constant dense<0.000000e+00> : vector<16x12xf32>
      %379 = tpu.matmul %377, %378, %cst_59 {dimension_numbers = #tpu.dot_dimension_numbers<[1], [0], [0], [1], [0, 0, 1, 1], [], []>} : vector<16x8xbf16>, vector<8x12xbf16>, vector<16x12xf32> -> vector<16x12xf32>
      %380 = arith.addf %375, %379 : vector<16x12xf32>
      %381 = vector.extract_strided_slice %2 {offsets = [2, 0, 0], sizes = [1, 16, 8], strides = [1, 1, 1]} : vector<9x16x8xbf16> to vector<1x16x8xbf16>
      %382 = vector.shape_cast %381 : vector<1x16x8xbf16> to vector<16x8xbf16>
      %383 = vector.extract_strided_slice %181 {offsets = [0, 2], sizes = [8, 12], strides = [1, 1]} : vector<8x14xbf16> to vector<8x12xbf16>
      %cst_60 = arith.constant dense<0.000000e+00> : vector<16x12xf32>
      %384 = tpu.matmul %382, %383, %cst_60 {dimension_numbers = #tpu.dot_dimension_numbers<[1], [0], [0], [1], [0, 0, 1, 1], [], []>} : vector<16x8xbf16>, vector<8x12xbf16>, vector<16x12xf32> -> vector<16x12xf32>
      %385 = arith.addf %380, %384 : vector<16x12xf32>
      %386 = vector.extract_strided_slice %2 {offsets = [3, 0, 0], sizes = [1, 16, 8], strides = [1, 1, 1]} : vector<9x16x8xbf16> to vector<1x16x8xbf16>
      %387 = vector.shape_cast %386 : vector<1x16x8xbf16> to vector<16x8xbf16>
      %388 = vector.extract_strided_slice %250 {offsets = [0, 0], sizes = [8, 12], strides = [1, 1]} : vector<8x14xbf16> to vector<8x12xbf16>
      %cst_61 = arith.constant dense<0.000000e+00> : vector<16x12xf32>
      %389 = tpu.matmul %387, %388, %cst_61 {dimension_numbers = #tpu.dot_dimension_numbers<[1], [0], [0], [1], [0, 0, 1, 1], [], []>} : vector<16x8xbf16>, vector<8x12xbf16>, vector<16x12xf32> -> vector<16x12xf32>
      %390 = arith.addf %385, %389 : vector<16x12xf32>
      %391 = vector.extract_strided_slice %2 {offsets = [4, 0, 0], sizes = [1, 16, 8], strides = [1, 1, 1]} : vector<9x16x8xbf16> to vector<1x16x8xbf16>
      %392 = vector.shape_cast %391 : vector<1x16x8xbf16> to vector<16x8xbf16>
      %393 = vector.extract_strided_slice %250 {offsets = [0, 1], sizes = [8, 12], strides = [1, 1]} : vector<8x14xbf16> to vector<8x12xbf16>
      %cst_62 = arith.constant dense<0.000000e+00> : vector<16x12xf32>
      %394 = tpu.matmul %392, %393, %cst_62 {dimension_numbers = #tpu.dot_dimension_numbers<[1], [0], [0], [1], [0, 0, 1, 1], [], []>} : vector<16x8xbf16>, vector<8x12xbf16>, vector<16x12xf32> -> vector<16x12xf32>
      %395 = arith.addf %390, %394 : vector<16x12xf32>
      %396 = vector.extract_strided_slice %2 {offsets = [5, 0, 0], sizes = [1, 16, 8], strides = [1, 1, 1]} : vector<9x16x8xbf16> to vector<1x16x8xbf16>
      %397 = vector.shape_cast %396 : vector<1x16x8xbf16> to vector<16x8xbf16>
      %398 = vector.extract_strided_slice %250 {offsets = [0, 2], sizes = [8, 12], strides = [1, 1]} : vector<8x14xbf16> to vector<8x12xbf16>
      %cst_63 = arith.constant dense<0.000000e+00> : vector<16x12xf32>
      %399 = tpu.matmul %397, %398, %cst_63 {dimension_numbers = #tpu.dot_dimension_numbers<[1], [0], [0], [1], [0, 0, 1, 1], [], []>} : vector<16x8xbf16>, vector<8x12xbf16>, vector<16x12xf32> -> vector<16x12xf32>
      %400 = arith.addf %395, %399 : vector<16x12xf32>
      %401 = vector.extract_strided_slice %2 {offsets = [6, 0, 0], sizes = [1, 16, 8], strides = [1, 1, 1]} : vector<9x16x8xbf16> to vector<1x16x8xbf16>
      %402 = vector.shape_cast %401 : vector<1x16x8xbf16> to vector<16x8xbf16>
      %403 = vector.extract_strided_slice %319 {offsets = [0, 0], sizes = [8, 12], strides = [1, 1]} : vector<8x14xbf16> to vector<8x12xbf16>
      %cst_64 = arith.constant dense<0.000000e+00> : vector<16x12xf32>
      %404 = tpu.matmul %402, %403, %cst_64 {dimension_numbers = #tpu.dot_dimension_numbers<[1], [0], [0], [1], [0, 0, 1, 1], [], []>} : vector<16x8xbf16>, vector<8x12xbf16>, vector<16x12xf32> -> vector<16x12xf32>
      %405 = arith.addf %400, %404 : vector<16x12xf32>
      %406 = vector.extract_strided_slice %2 {offsets = [7, 0, 0], sizes = [1, 16, 8], strides = [1, 1, 1]} : vector<9x16x8xbf16> to vector<1x16x8xbf16>
      %407 = vector.shape_cast %406 : vector<1x16x8xbf16> to vector<16x8xbf16>
      %408 = vector.extract_strided_slice %319 {offsets = [0, 1], sizes = [8, 12], strides = [1, 1]} : vector<8x14xbf16> to vector<8x12xbf16>
      %cst_65 = arith.constant dense<0.000000e+00> : vector<16x12xf32>
      %409 = tpu.matmul %407, %408, %cst_65 {dimension_numbers = #tpu.dot_dimension_numbers<[1], [0], [0], [1], [0, 0, 1, 1], [], []>} : vector<16x8xbf16>, vector<8x12xbf16>, vector<16x12xf32> -> vector<16x12xf32>
      %410 = arith.addf %405, %409 : vector<16x12xf32>
      %411 = vector.extract_strided_slice %2 {offsets = [8, 0, 0], sizes = [1, 16, 8], strides = [1, 1, 1]} : vector<9x16x8xbf16> to vector<1x16x8xbf16>
      %412 = vector.shape_cast %411 : vector<1x16x8xbf16> to vector<16x8xbf16>
      %413 = vector.extract_strided_slice %319 {offsets = [0, 2], sizes = [8, 12], strides = [1, 1]} : vector<8x14xbf16> to vector<8x12xbf16>
      %cst_66 = arith.constant dense<0.000000e+00> : vector<16x12xf32>
      %414 = tpu.matmul %412, %413, %cst_66 {dimension_numbers = #tpu.dot_dimension_numbers<[1], [0], [0], [1], [0, 0, 1, 1], [], []>} : vector<16x8xbf16>, vector<8x12xbf16>, vector<16x12xf32> -> vector<16x12xf32>
      %415 = arith.addf %410, %414 : vector<16x12xf32>
      %416 = vector.broadcast %3 : vector<16x1xf32> to vector<16x12xf32>
      %417 = arith.addf %415, %416 : vector<16x12xf32>
      %cst_67 = arith.constant 0.000000e+00 : f32
      %418 = vector.broadcast %cst_67 : f32 to vector<16x12xf32>
      %419 = arith.maximumf %417, %418 : vector<16x12xf32>
      %420 = arith.maximumf %369, %419 : vector<16x12xf32>
      %421 = arith.truncf %420 : vector<16x12xf32> to vector<16x12xbf16>
      %c0_68 = arith.constant 0 : index
      %422 = arith.index_cast %arg8 : i32 to index
      %c0_69 = arith.constant 0 : index
      %c0_70 = arith.constant 0 : index
      %423 = vector.load %arg7[%c0_68, %422, %c0_69, %c0_70] : memref<1x3x16x12xbf16, #tpu.memory_space<vmem>>, vector<1x1x16x12xbf16>
      %424 = vector.shape_cast %423 : vector<1x1x16x12xbf16> to vector<16x12xbf16>
      %425 = vector.shape_cast %421 : vector<16x12xbf16> to vector<1x1x16x12xbf16>
      tpu.vector_store %arg7[%c0_68, %422, %c0_69, %c0_70], %425 {strides = array<i32>} : memref<1x3x16x12xbf16, #tpu.memory_space<vmem>>, vector<1x1x16x12xbf16>,
    }
    %c3_i32_9 = arith.constant 3 : i32
    return
  }
  func.func @transform_0(%arg0: i32, %arg1: i32) -> (i32, i32, i32, i32) {
    %c0_i32 = arith.constant 0 : i32
    %c0_i32_0 = arith.constant 0 : i32
    %c0_i32_1 = arith.constant 0 : i32
    %c0_i32_2 = arith.constant 0 : i32
    return %arg0, %c0_i32, %c0_i32_0, %c0_i32_1 : i32, i32, i32, i32
  }
  func.func @transform_1(%arg0: i32, %arg1: i32) -> (i32, i32, i32) {
    %c0_i32 = arith.constant 0 : i32
    %c0_i32_0 = arith.constant 0 : i32
    %c0_i32_1 = arith.constant 0 : i32
    %c0_i32_2 = arith.constant 0 : i32
    return %c0_i32, %c0_i32_0, %c0_i32_1 : i32, i32, i32
  }
  func.func @transform_2(%arg0: i32, %arg1: i32) -> (i32, i32) {
    %c0_i32 = arith.constant 0 : i32
    %c0_i32_0 = arith.constant 0 : i32
    %c0_i32_1 = arith.constant 0 : i32
    return %c0_i32, %c0_i32_0 : i32, i32
  }
  func.func @transform_3(%arg0: i32, %arg1: i32) -> (i32, i32, i32) {
    %c0_i32 = arith.constant 0 : i32
    %c0_i32_0 = arith.constant 0 : i32
    %c0_i32_1 = arith.constant 0 : i32
    %c0_i32_2 = arith.constant 0 : i32
    return %c0_i32, %c0_i32_0, %c0_i32_1 : i32, i32, i32
  }
  func.func @transform_4(%arg0: i32, %arg1: i32) -> (i32, i32) {
    %c0_i32 = arith.constant 0 : i32
    %c0_i32_0 = arith.constant 0 : i32
    %c0_i32_1 = arith.constant 0 : i32
    return %c0_i32, %c0_i32_0 : i32, i32
  }
  func.func @transform_5(%arg0: i32, %arg1: i32) -> (i32, i32, i32, i32) {
    %c0_i32 = arith.constant 0 : i32
    %c0_i32_0 = arith.constant 0 : i32
    %c0_i32_1 = arith.constant 0 : i32
    return %arg0, %arg1, %c0_i32, %c0_i32_0 : i32, i32, i32, i32
  }
}

</mosaic_0001>

<bundles_post_ra>
// kernel: tpu_custom_call.1
= control target key start
LH: loop header
LB: loop body
LE: loop exit
PB: predicated region body
PF: predicated region fallthrough
CT: control target
= control target key end

     0   :  { %s3131_s0 = inlined_call_operand.hbm [shape: bf16[2,16,1,16], index: 0, kind: input, shape index: {}]   ;;  %s3132_s1 = inlined_call_operand.hbm [shape: f32[9,8,1], index: 1, kind: input, shape index: {}]   ;;  %s3133_s2 = inlined_call_operand.hbm [shape: f32[8,1], index: 2, kind: input, shape index: {}]   ;;  %s3134_s3 = inlined_call_operand.hbm [shape: bf16[9,16,8], index: 3, kind: input, shape index: {}]   ;;  %s3135_s4 = inlined_call_operand.hbm [shape: f32[16,1], index: 4, kind: input, shape index: {}]   ;;  %s3136_s5 = inlined_call_operand.hbm [shape: bf16[2,6,16,12], index: 5, kind: output, shape index: {}]  }
   0x1   :  { %3152 = sst [smem:[#allocation22_spill]] %s3131_s0 }
   0x2   :  { %3153 = sst [smem:[#allocation23_spill]] %s3132_s1 }
   0x3   :  { %3154 = sst [smem:[#allocation24_spill]] %s3136_s5 }
   0x4   :  { %10 = vsyncpa [#allocation3], 0 }
   0x5   :  { %12 = vsyncpa [#allocation3 + $0x1], 0 }
   0x6   :  { %13 = vsyncpa [#allocation6], 0 }
   0x7   :  { %14 = vsyncpa [#allocation9], 0 }
   0x8   :  { %15 = vsyncpa [#allocation4], 0 }
   0x9   :  { %17 = vsyncpa [#allocation4 + $0x1], 0  ;;  %s2440_s18 = smov 0   ;;  %s2442_s19 = smov 0  }
   0xa   :  { %s2444_s20 = smov 0   ;;  %s2446_s21 = smov 0  }
   0xb   :  { %s2448_s22 = smov 0   ;;  %s2450_s23 = smov 0  }
   0xc   :  { %s2452_s24 = smov 0   ;;  %s2454_s25 = smov 0  }
   0xd   :  { %s2456_s26 = smov 0   ;;  %s2458_s27 = smov 0  }
   0xe   :  { %s2460_s28 = smov 0  }
   0xf LB: > { %3155 = sst [smem:[#allocation16_spill]] %s2345_s18  ;;  %s1729_s29 = sadd.s32 4294967295, %s2385_s28   ;;  %s2385_s28 = sphi %s2460_s28, %s23_s28   ;;  %s2381_s27 = sphi %s2458_s27, %s3198_s27   ;;  %s2377_s26 = sphi %s2456_s26, %s3197_s26   ;;  %s2373_s25 = sphi %s2454_s25, %s3196_s25   ;;  %s2369_s24 = sphi %s2452_s24, %s3195_s24   ;;  %s2365_s23 = sphi %s2450_s23, %s3194_s23   ;;  %s2361_s22 = sphi %s2448_s22, %s3193_s22   ;;  %s2357_s21 = sphi %s2446_s21, %s3192_s21   ;;  %s2353_s20 = sphi %s2444_s20, %s3191_s20   ;;  %s2349_s19 = sphi %s2442_s19, %s3190_s19   ;;  %s2345_s18 = sphi %s2440_s18, %s3189_s18  }
  0x10   : > { %3156 = sst [smem:[#allocation17_spill]] %s2349_s19  ;;  %s1730_s30 = sadd.s32 4294967294, %s2385_s28  }
  0x11   : > { %3157 = sst [smem:[#allocation18_spill]] %s2369_s24  ;;  %p55_p0 = scmp.ne.s32.totalorder %s2361_s22, %s2357_s21 }
  0x12   : > { %3158 = sst [smem:[#allocation19_spill]] %s2373_s25  ;;  %p2496_p1 = scmp.eq.s32.totalorder %s1729_s29, 0 }
  0x13   : > { %p164_p2 = scmp.ne.s32.totalorder %s2353_s20, %s2349_s19  ;;  %p165_p3 = scmp.eq.s32.totalorder %s1729_s29, 3 }
  0x14   : > { %s3159_s6 = scalar_select %p2496_p1, 1, 0 }
  0x15   : > { %p2504_p4 = por %p2496_p1, %p55_p0  ;;  %p170_p5 = scmp.ne.s32.totalorder %s2349_s19, %s2345_s18 }
  0x16   : > { %p2510_p6 = por %p165_p3, %p164_p2  ;;  %p171_p7 = scmp.eq.s32.totalorder %s1730_s30, 3 }
  0x17   : > { %s3160_s7 = scalar_select %p2504_p4, 1, 0 }
  0x18   : > { %s3161_s8 = scalar_select %p2510_p6, 1, 0 }
  0x19   : > { %p1731_p8 = scmp.ge.s32.totalorder %s2385_s28, 1  ;;  %p178_p9 = scmp.lt.s32.totalorder %s2385_s28, 5 }
  0x1a   : > { %3162 = sst [smem:[#allocation20_spill]] %s3161_s8  ;;  %p2516_p10 = por %p171_p7, %p170_p5 }
  0x1b   : > { %p2520_p11 = pnand %p1731_p8, %p178_p9  ;;  %s2391_s11 = smov [#allocation5]  }
  0x1c   : > { %s3163_s9 = scalar_select %p2516_p10, 1, 0 }
  0x1d   : > { %s3165_s10 = scalar_select %p2520_p11, 1, 0 }
  0x1e   : > { %3164 = sst [smem:[#allocation21_spill]] %s3163_s9  ;;  %s190_s12 = sshll.u32 %s2391_s11, 4  ;;  %s191_s12 = int_to_ptr.vmem [resolvable:$true] %s190_s12 }
  0x1f   : > { %p1963_p12 = pneg %p2520_p11  ;;  %s2392_s14 = smov [#allocation8]  }
  0x20   : > { %s214_s15 = sshll.u32 %s2392_s14, 4  ;;  %s3167_s1 = sld [smem:[#allocation23_spill]]  ;;  %s2532_s15 = int_to_ptr.vmem [resolvable:$true] %s214_s15 }
  0x21   : > { %p2528_p13 = pnand %p1963_p12, %p2496_p1 }
  0x23   : > { %p2542_p2 = pneg %p2528_p13 }
  0x26   : > { %s2109_s21 = scalar_lea.hbm %s3167_s1, 1152 }
  0x27   : > { %p2110_p0 = scmp.ne.s32.totalorder %s3167_s1, %s2109_s21  ;;  %p2116_p7 = scmp.lt.u32.totalorder %s2109_s21, %s3167_s1 }
  0x29   : > { %p2112_p3 = pnand %p2542_p2, %p2110_p0 }
  0x2b   : > { %p2113_p5 = pneg %p2112_p3 }
  0x2d   : > { %p2118_p8 = pnand %p2116_p7, %p2113_p5 }
  0x2f   : > { %2121 = shalt.err (!%p2118_p8)
}
  0x30   : > { %s2122_s16 = scalar_lea.vmem %s191_s12, 1152  ;;  %p2130_p6 = scmp.lt.s32.totalorder %s191_s12, %s191_s12 }
  0x31   : > { %p2123_p9 = scmp.ne.s32.totalorder %s191_s12, %s2122_s16  ;;  %p2131_p1 = scmp.lt.s32.totalorder %s2122_s16, %s2122_s16 }
  0x33   : > { %p2125_p12 = pnand %p2123_p9, %p2542_p2  ;;  %p2132_p4 = por %p2131_p1, %p2130_p6 }
  0x35   : > { %p2126_p10 = pneg %p2125_p12 }
  0x37   : > { %p2133_p11 = pnand %p2132_p4, %p2126_p10 }
  0x39   : > { %2136 = shalt.err (!%p2133_p11)
}
  0x3a   : > { %s3147_s17 = smov 128   ;;  %s3148_s29 = smov 8  }
  0x3b   : > { %1966 = dma.hbm_to_vmem [thread:$0]  (!%p2528_p13), %s3167_s1, 1152, %s191_s12, [#allocation6], %s3147_s17, %s3147_s17, %s3148_s29  }
  0x3c   : > { %s2137_s18 = scalar_lea.hbm %s3134_s3, 1152 }
  0x3d   : > { %p2138_p1 = scmp.ne.s32.totalorder %s3134_s3, %s2137_s18  ;;  %p2144_p10 = scmp.lt.u32.totalorder %s2137_s18, %s3134_s3 }
  0x3f   : > { %p2140_p4 = pnand %p2138_p1, %p2542_p2 }
  0x41   : > { %p2141_p6 = pneg %p2140_p4 }
  0x43   : > { %p2146_p11 = pnand %p2144_p10, %p2141_p6 }
  0x45   : > { %2149 = shalt.err (!%p2146_p11)
}
  0x46   : > { %s2150_s12 = scalar_lea.vmem %s2532_s15, 1152  ;;  %p2158_p7 = scmp.lt.s32.totalorder %s2532_s15, %s2532_s15 }
  0x47   : > { %p2151_p0 = scmp.ne.s32.totalorder %s2532_s15, %s2150_s12  ;;  %p2159_p8 = scmp.lt.s32.totalorder %s2150_s12, %s2150_s12 }
  0x49   : > { %p2153_p3 = pnand %p2151_p0, %p2542_p2  ;;  %p2160_p9 = por %p2159_p8, %p2158_p7 }
  0x4b   : > { %p2154_p5 = pneg %p2153_p3 }
  0x4d   : > { %p2161_p12 = pnand %p2160_p9, %p2154_p5 }
  0x4f   : > { %2164 = shalt.err (!%p2161_p12)
}
  0x50   : > { %s2395_s5 = smov 64   ;;  %s2396_s18 = smov 4  }
  0x51   : > { %1972 = dma.hbm_to_vmem [thread:$0]  (!%p2528_p13), %s3134_s3, 1152, %s2532_s15, [#allocation9], %s2395_s5, %s2395_s5, %s2396_s18  }
  0x52   : > { %s2397_s9 = smov [#allocation7]   ;;  %s2398_s30 = smov [#allocation10]  }
  0x53   : > { %s204_s21 = sshll.u32 %s2397_s9, 4  ;;  %s227_s14 = sshll.u32 %s2398_s30, 4  ;;  %s205_s21 = int_to_ptr.vmem [resolvable:$true] %s204_s21  ;;  %s228_s14 = int_to_ptr.vmem [resolvable:$true] %s227_s14 }
  0x54   : > { %s2165_s17 = scalar_lea.hbm %s3133_s2, 128 }
  0x55   : > { %p2166_p1 = scmp.ne.s32.totalorder %s3133_s2, %s2165_s17  ;;  %p2172_p10 = scmp.lt.u32.totalorder %s2165_s17, %s3133_s2 }
  0x57   : > { %p2168_p4 = pnand %p2166_p1, %p2542_p2 }
  0x59   : > { %p2169_p6 = pneg %p2168_p4 }
  0x5b   : > { %p2174_p11 = pnand %p2172_p10, %p2169_p6 }
  0x5d   : > { %2177 = shalt.err (!%p2174_p11)
}
  0x5e   : > { %s2178_s15 = scalar_lea.vmem %s205_s21, 128  ;;  %p2186_p7 = scmp.lt.s32.totalorder %s205_s21, %s205_s21 }
  0x5f   : > { %p2179_p0 = scmp.ne.s32.totalorder %s205_s21, %s2178_s15  ;;  %p2187_p8 = scmp.lt.s32.totalorder %s2178_s15, %s2178_s15 }
  0x61   : > { %p2181_p3 = pnand %p2179_p0, %p2542_p2  ;;  %p2188_p9 = por %p2187_p8, %p2186_p7 }
  0x63   : > { %p2182_p5 = pneg %p2181_p3 }
  0x65   : > { %p2189_p12 = pnand %p2188_p9, %p2182_p5 }
  0x67   : > { %2192 = shalt.err (!%p2189_p12)
}
  0x68   : > { %1969 = dma.hbm_to_vmem [thread:$0]  (!%p2528_p13), %s3133_s2, 128, %s205_s21, [#allocation6]  }
  0x69   : > { %s2193_s17 = scalar_lea.hbm %s3135_s4, 256 }
  0x6a   : > { %p2194_p1 = scmp.ne.s32.totalorder %s3135_s4, %s2193_s17  ;;  %p2200_p10 = scmp.lt.u32.totalorder %s2193_s17, %s3135_s4 }
  0x6c   : > { %p2196_p4 = pnand %p2194_p1, %p2542_p2 }
  0x6e   : > { %p2197_p6 = pneg %p2196_p4 }
  0x70   : > { %p2202_p11 = pnand %p2200_p10, %p2197_p6 }
  0x72   : > { %2205 = shalt.err (!%p2202_p11)
}
  0x73   : > { %s2206_s9 = scalar_lea.vmem %s228_s14, 256  ;;  %p2214_p7 = scmp.lt.s32.totalorder %s228_s14, %s228_s14 }
  0x74   : > { %p2207_p0 = scmp.ne.s32.totalorder %s228_s14, %s2206_s9  ;;  %p2215_p8 = scmp.lt.s32.totalorder %s2206_s9, %s2206_s9 }
  0x76   : > { %p2209_p3 = pnand %p2207_p0, %p2542_p2  ;;  %p2216_p9 = por %p2215_p8, %p2214_p7 }
  0x78   : > { %p2210_p5 = pneg %p2209_p3 }
  0x7a   : > { %p2217_p12 = pnand %p2216_p9, %p2210_p5 }
  0x7c   : > { %2220 = shalt.err (!%p2217_p12)
}
  0x7d   : > { %s3169_s21 = smov 8   ;;  %s3170_s30 = smov 128  }
  0x7e   : > { %1975 = dma.hbm_to_vmem [thread:$0]  (!%p2528_p13), %s3135_s4, 256, %s228_s14, [#allocation9], %s3170_s30, %s3170_s30, %s3169_s21  }
  0x7f   : > { %s32_s13 = sadd.s32 1, %s2377_s26  ;;  %s35_s11 = sadd.s32 1, %s2381_s27 }
  0x80   : > { %p33_p2 = scmp.ge.s32.totalorder %s32_s13, 2  ;;  %s42_s15 = sadd.s32 1, %s2365_s23 }
  0x81   : > { %p49_p1 = scmp.ne.s32.totalorder %s2365_s23, %s2361_s22  ;;  %p50_p4 = scmp.eq.s32.totalorder %s2385_s28, 0 }
  0x82   : > { %s3200_s13 = smov (%p33_p2, %s32_s13), 0  ;;  %s3202_s11 = smov (!%p33_p2, %s35_s11), %s2381_s27 }
  0x83   : > { %s150_s1 = ssub.s32 %s2377_s26, %s3200_s13  ;;  %p37_p6 = scmp.ge.s32.totalorder %s3202_s11, 2 }
  0x84   : > { %s154_s29 = sadd.s32 1, %s2353_s20  ;;  %p2635_p10 = por %p50_p4, %p49_p1 }
  0x85   : > { %p1988_p13 = scmp.lt.s32.totalorder %s2385_s28, 4  ;;  %s3204_s11 = smov (%p37_p6, %s3202_s11), 0 }
  0x86   : > { %s241_s19 = sand.u32 1, %s2365_s23   ;;  %s1792_s24 = sshll.u32 %s2381_s27, 8 }
  0x87   : > { %s39_s17 = ssub.s32 %s2381_s27, %s3204_s11  ;;  %s1737_s18 = sshll.u32 %s241_s19, 4 }
  0x88   : > { %p40_p11 = scmp.eq.s32.totalorder %s39_s17, 0  ;;  %s151_s5 = sor.u32 %s150_s1, %s39_s17 }
  0x89   : > { %p152_p0 = scmp.eq.s32.totalorder %s151_s5, 0  ;;  %s3172_s0 = sld [smem:[#allocation22_spill]] }
  0x8a   : > { %s2647_s25 = scalar_select %p40_p11, %s2365_s23, %s42_s15  }
  0x8b   : > { %s2650_s8 = scalar_select %p152_p0, %s2353_s20, %s154_s29  }
  0x8c   : > { %s245_s16 = scalar_lea.vmem [#allocation2], %s1737_s18  ;;  %p2661_p3 = pnand %p1988_p13, %p2635_p10 }
  0x8d   : > { %s252_s12 = sshll.u32 %s245_s16, 4  ;;  %s2667_s15 = scalar_lea.sflag [#allocation3], %s241_s19  ;;  %s2665_s12 = int_to_ptr.vmem [resolvable:$true] %s252_s12 }
  0x8e   : > { %p2223_p7 = pneg %p2661_p3 }
  0x8f   : > { %s2655_s30 = scalar_lea.hbm %s3172_s0, %s1792_s24  ;;  %s2226_s17 = scalar_lea.hbm %s3172_s0, 512 }
  0x90   : > { %s2221_s29 = scalar_lea.hbm %s2655_s30, 256  ;;  %p2227_p12 = scmp.lt.u32.totalorder %s2655_s30, %s3172_s0 }
  0x91   : > { %p2222_p5 = scmp.ne.s32.totalorder %s2655_s30, %s2221_s29  ;;  %p2228_p2 = scmp.lt.u32.totalorder %s2226_s17, %s2221_s29 }
  0x92   : > { %p2230_p4 = scmp.lt.u32.totalorder %s2221_s29, %s2655_s30 }
  0x93   : > { %p2224_p8 = pnand %p2223_p7, %p2222_p5  ;;  %p2229_p1 = por %p2228_p2, %p2227_p12 }
  0x95   : > { %p2225_p9 = pneg %p2224_p8  ;;  %p2231_p6 = por %p2230_p4, %p2229_p1 }
  0x97   : > { %p2232_p10 = pnand %p2231_p6, %p2225_p9 }
  0x99   : > { %2235 = shalt.err (!%p2232_p10)
}
  0x9a   : > { %s2236_s19 = scalar_lea.vmem %s2665_s12, 256  ;;  %s2399_s9 = smov [#allocation2]  }
  0x9b   : > { %p2237_p13 = scmp.ne.s32.totalorder %s2665_s12, %s2236_s19  ;;  %s2241_s21 = sshll.u32 %s2399_s9, 4  ;;  %s2242_s21 = int_to_ptr.vmem [resolvable:$false] %s2241_s21 }
  0x9c   : > { %s2243_s16 = scalar_lea.vmem %s2242_s21, 512  ;;  %p2244_p5 = scmp.lt.s32.totalorder %s2665_s12, %s2242_s21 }
  0x9d   : > { %p2239_p11 = pnand %p2237_p13, %p2223_p7  ;;  %p2245_p8 = scmp.lt.s32.totalorder %s2243_s16, %s2236_s19 }
  0x9f   : > { %p2240_p0 = pneg %p2239_p11  ;;  %p2246_p12 = por %p2245_p8, %p2244_p5 }
  0xa1   : > { %p2247_p2 = pnand %p2246_p12, %p2240_p0 }
  0xa3   : > { %2250 = shalt.err (!%p2247_p2)
}
  0xa4   : > { %s2400_s29 = smov 16   ;;  %s2401_s14 = smov 1  }
  0xa5   : > { %1979 = dma.hbm_to_vmem [thread:$0]  (!%p2661_p3), %s2655_s30, 256, %s2665_s12, %s2667_s15, %s2400_s29, %s2400_s29, %s2401_s14  }
  0xa6   : > { %p3174_p7 = scmp.ne.s32.totalorder %s3165_s10, 0 }
  0xa7   : > { %s266_s24 = sand.u32 (!%p3174_p7), 1, %s2361_s22   ;;  %p3175_p9 = scmp.ne.s32.totalorder (!%p3174_p7), %s3160_s7, 0 }
  0xa8   : > { %264 = sbr.rel (%p3174_p7) target bundleno = 892 (0x37c), region = 40  ;;  %s2698_s17 = sshll.u32 (!%p3174_p7), %s266_s24, 4 }
  0xa9   : > { %s267_s5 = scalar_lea.sflag (!%p3174_p7), [#allocation3], %s266_s24  ;;  %s270_s18 = scalar_lea.vmem (!%p3174_p7), [#allocation2], %s2698_s17 }
  0xaf   : > { %2328 = dma.done.wait (%p3175_p9), %s267_s5, 256  }
  0xb0   : > { %2330 = vsyncadd (%p3175_p9), %s267_s5, 4294967040  ;;  %p3176_p1 = scmp.ne.s32.totalorder %s3159_s6, 0 }
  0xb2   : > { %2332 = dma.done.wait (%p3176_p1), [#allocation6], 1280  }
  0xb3   : > { %2334 = vsyncadd (%p3176_p1), [#allocation6], 4294966016 }
  0xb4   : > { %2336 = dma.done.wait (%p3176_p1), [#allocation9], 1408  }
  0xb5   : > { %2338 = vsyncadd (%p3176_p1), [#allocation9], 4294965888  ;;  %s3177_s10 = sld [smem:[#allocation17_spill]]  ;;  %v2718_v0 = vld [vmem:[#allocation5] sm:$0xff]  ;;  %v2720_v1 = vld [vmem:[#allocation5 + $0x8] sm:$0xff]  ;;  %s2779_s7 = smov 0  }
  0xb6   : > { %v2722_v2 = vld [vmem:[#allocation5 + $0x10] sm:$0xff]  ;;  %v2724_v3 = vld [vmem:[#allocation5 + $0x18] sm:$0xff]  ;;  %v2726_v4 = vld [vmem:[#allocation5 + $0x20] sm:$0xff] }
  0xb7   : > { %v2728_v5 = vld [vmem:[#allocation5 + $0x28] sm:$0xff]  ;;  %v2730_v6 = vld [vmem:[#allocation5 + $0x30] sm:$0xff]  ;;  %v2732_v7 = vld [vmem:[#allocation5 + $0x38] sm:$0xff] }
  0xb8   : > { %v2734_v8 = vld [vmem:[#allocation5 + $0x40] sm:$0xff]  ;;  %v2736_v9 = vld [vmem:[#allocation7] sm:$0xff]  ;;  %v2738_v10 = vld [vmem:[#allocation8] sm:$0xf] }
  0xb9   : > { %v2740_v11 = vld [vmem:[#allocation8 + $0x4] sm:$0xf]  ;;  %v2742_v12 = vld [vmem:[#allocation8 + $0x8] sm:$0xf]  ;;  %v2744_v13 = vld [vmem:[#allocation8 + $0xc] sm:$0xf] }
  0xba   : > { %v2746_v14 = vld [vmem:[#allocation8 + $0x10] sm:$0xf]  ;;  %v2748_v15 = vld [vmem:[#allocation8 + $0x14] sm:$0xf]  ;;  %v2750_v16 = vld [vmem:[#allocation8 + $0x18] sm:$0xf] }
  0xbb   : > { %s3151_s30 = sand.u32 1, %s3177_s10   ;;  %v2752_v17 = vld [vmem:[#allocation8 + $0x1c] sm:$0xf]  ;;  %v2754_v18 = vld [vmem:[#allocation8 + $0x20] sm:$0xf]  ;;  %v2774_v28 = vld [vmem:[#allocation10] sm:$0xff] }
  0xbc   : > { %s2716_s12 = smul.u32 24, %s3151_s30  ;;  %v2756_v19 = vld [vmem:[#allocation8 + $0x24] sm:$0xf]  ;;  %v2758_v20 = vld [vmem:[#allocation8 + $0x28] sm:$0xf]  ;;  %v2776_v29 = vld [vmem:[#allocation10 + $0x8] sm:$0xff] }
  0xbd   : > { %v2760_v21 = vld [vmem:[#allocation8 + $0x2c] sm:$0xf]  ;;  %v2762_v22 = vld [vmem:[#allocation8 + $0x30] sm:$0xf]  ;;  %v2764_v23 = vld [vmem:[#allocation8 + $0x34] sm:$0xf] }
  0xbe   : > { %v2766_v24 = vld [vmem:[#allocation8 + $0x38] sm:$0xf]  ;;  %v2768_v25 = vld [vmem:[#allocation8 + $0x3c] sm:$0xf]  ;;  %v2770_v26 = vld [vmem:[#allocation8 + $0x40] sm:$0xf] }
  0xbf   : > { %v2772_v27 = vld [vmem:[#allocation8 + $0x44] sm:$0xf]  ;;  %s312_s6 = scalar_lea.vmem [#allocation11], %s2716_s12 }
  0xc0 LB: >> { %s3178_s1 = sld [smem:[#allocation18_spill]]  ;;  %v2402_v30 = vmov 0   ;;  %v384_v31 = vlaneseq  ;;  %s2403_s16 = smov 127   ;;  %v2405_v61 = vmov 0.0   ;;  %vm2406_vm0 = vmmov 0   ;;  %s2389_s7 = sphi %s2779_s7, %s350_s7  }
  0xc1   : >> { %2108 = vset.pattern.permute.xlu1 %v2402_v30  ;;  %2107 = vset.pattern.permute.xlu0 %v2402_v30  ;;  %s2404_s29 = smov 126   ;;  %vm645_vm1 = vcmask 1043456   ;;  %vm641_vm2 = vcmask 64512   ;;  %s1795_s14 = sshll.u32 %s2389_s7, 3  ;;  %vm1560_vm3 = vcmask 93184  }
  0xc2   : >> { %425 = vperm.xlu1 %2108, %v2726_v4   ;;  %392 = vperm.xlu0 %2107, %v2720_v1   ;;  %v385_v32 = vshrl.u32 %v384_v31, 7  ;;  %s1559_s24 = scalar_lea.vmem %s312_s6, %s1795_s14 [#allocation11] }
  0xc3   : >> { %1839 = vmatprep.subr.bf16.mxu1 %v2405_v61  ;;  %1833 = vmatprep.subr.bf16.mxu0 %v2405_v61 }
  0xc4   : >> { %v2801_v36 = vsub.s32 0, %v385_v32  ;;  %1841 = vmatprep.mubr.msk.bf16.mxu1 %vm2406_vm0, %v2405_v61  ;;  %1835 = vmatprep.mubr.msk.bf16.mxu0 %vm2406_vm0, %v2405_v61 }
  0xc6   : >> { %436 = vperm.xlu1 %2108, %v2728_v5   ;;  %403 = vperm.xlu0 %2107, %v2722_v2   ;;  %s351_s15 = smul.u32 3, %s3178_s1 }
  0xc8   : >> { %s352_s19 = sadd.s32 %s2389_s7, %s351_s15  ;;  %s350_s7 = sadd.s32 1, %s2389_s7  }
  0xc9   : >> { %p353_p3 = scmp.lt.s32.totalorder %s352_s19, 5  ;;  %p347_p4 = scmp.ge.s32.totalorder %s350_s7, 3  }
  0xca   : >> { %469 = vperm.xlu1 %2108, %v2734_v8   ;;  %458 = vperm.xlu0 %2107, %v2732_v7   ;;  %s3179_s5 = sld [smem:[#allocation18_spill]] (%p347_p4)  ;;  %s3180_s10 = sld [smem:[#allocation19_spill]] (%p347_p4) }
  0xcb   : >> { %s3206_s19 = smov (!%p353_p3, %s352_s19), 5  ;;  %s3181_s1 = sld [smem:[#allocation17_spill]] (%p347_p4) }
  0xcc   : >> { %s1746_s9 = sshll.u32 %s3206_s19, 1  ;;  %s3182_s15 = sld [smem:[#allocation20_spill]] (%p347_p4) }
  0xcd   : >> { %s2797_s21 = scalar_lea.vmem %s270_s18, %s1746_s9 [#allocation2]  ;;  %s3183_s7 = sld [smem:[#allocation24_spill]] (%p347_p4) }
  0xce   : >> { %414 = vperm.xlu1 %2108, %v2724_v3   ;;  %381 = vperm.xlu0 %2107, %v2718_v0   ;;  %v1748_v33 = vld [vmem:[%s2797_s21 + $0x1] sm:$0x1]  ;;  %v357_v34 = vld [vmem:[%s2797_s21] sm:$0x1]  ;;  %v1750_v42 = vld [vmem:[%s2797_s21 + $0x2] sm:$0x1] }
  0xcf   : >> { %v362_v35 = vunpack.c.l.bf16 %v1748_v33  ;;  %v358_v37 = vunpack.c.l.bf16 %v357_v34  ;;  %v366_v45 = vunpack.c.l.bf16 %v1750_v42  ;;  %v1752_v54 = vld [vmem:[%s2797_s21 + $0x3] sm:$0x1]  ;;  %v1754_v30 = vld [vmem:[%s2797_s21 + $0x4] sm:$0x1]  ;;  %s2407_s12 = smov (%p347_p4), [#allocation11]  }
  0xd0   : >> { %v370_v57 = vunpack.c.l.bf16 %v1752_v54  ;;  %v374_v33 = vunpack.c.l.bf16 %v1754_v30  ;;  %s1796_s19 = smul.u32 (%p347_p4), 6, %s3179_s5 }
  0xd1   : >> { %v2804_v38 = vrot.slane %v362_v35, %v2801_v36  ;;  %v2807_v39 = vrot.slane %v358_v37, %v2801_v36  ;;  %v2824_v49 = vrot.slane %v366_v45, %v2801_v36  ;;  %s1942_s9 = smul.u32 (%p347_p4), 12, %s3180_s10  ;;  %s3184_s17 = sand.u32 (%p347_p4), 1, %s3181_s1  }
  0xd2   : >> { %447 = vperm.xlu1 %2108, %v2730_v6   ;;  %v2841_v60 = vrot.slane %v370_v57, %v2801_v36  ;;  %v2861_v37 = vrot.slane %v374_v33, %v2801_v36  ;;  %s3070_s18 = scalar_lea.sflag (%p347_p4), [#allocation4], %s3184_s17  ;;  %p3185_p10 = scmp.ne.s32.totalorder (%p347_p4), %s3182_s15, 0 }
 0x141   : >> { %v2809_v40 = vpop.permute.xlu1 %425  ;;  %v2811_v41 = vpop.permute.xlu0 %392 }
 0x142   : >> { %v428_v43 = vmul.f32 %v2809_v40, %v2804_v38  ;;  %v395_v44 = vmul.f32 %v2811_v41, %v2807_v39  ;;  %v488_v59 = vmul.f32 %v2804_v38, %v2811_v41  ;;  %v502_v63 = vmul.f32 %v2824_v49, %v2809_v40 }
 0x143   : >> { %v537_v32 = vmul.f32 %v2824_v49, %v2811_v41  ;;  %v586_v54 = vmul.f32 %v2841_v60, %v2811_v41 }
 0x144   : >> { %430 = vrot.lane.b32.xlu1 %v428_v43, %s2403_s16  ;;  %397 = vrot.lane.b32.xlu0 %v395_v44, %s2403_s16  ;;  %v551_v43 = vmul.f32 %v2841_v60, %v2809_v40  ;;  %v1756_v44 = vld [vmem:[%s2797_s21 + $0x5] sm:$0x1]  ;;  %s1580_s21 = sshll.u32 (%p347_p4), %s312_s6, 4  ;;  %s2255_s6 = sshll.u32 (%p347_p4), %s2407_s12, 4  ;;  %s3061_s21 = int_to_ptr.vmem [resolvable:$true] %s1580_s21  ;;  %s2256_s6 = int_to_ptr.vmem [resolvable:$false] %s2255_s6 }
 0x145   : >> { %v437_v46 = vpop.permute.xlu1 %436  ;;  %v404_v47 = vpop.permute.xlu0 %403  ;;  %s2251_s0 = scalar_lea.vmem (%p347_p4), %s3061_s21, 384  ;;  %s2257_s5 = scalar_lea.vmem (%p347_p4), %s2256_s6, 768 }
 0x146   : >> { %v406_v48 = vmul.f32 %v404_v47, %v2807_v39  ;;  %v439_v52 = vmul.f32 %v437_v46, %v2804_v38  ;;  %v494_v55 = vmul.f32 %v2804_v38, %v404_v47  ;;  %v508_v58 = vmul.f32 %v2824_v49, %v437_v46  ;;  %p2252_p6 = scmp.ne.s32.totalorder (%p347_p4), %s3061_s21, %s2251_s0  ;;  %p2258_p0 = scmp.lt.s32.totalorder (%p347_p4), %s3061_s21, %s2256_s6 }
 0x147   : >> { %v557_v34 = vmul.f32 %v2841_v60, %v437_v46  ;;  %v543_v35 = vmul.f32 %v2824_v49, %v404_v47  ;;  %v592_v45 = vmul.f32 %v2841_v60, %v404_v47  ;;  %p2259_p5 = scmp.lt.s32.totalorder (%p347_p4), %s2257_s5, %s2251_s0 }
 0x148   : >> { %480 = vperm.xlu1 %2108, %v2736_v9   ;;  %408 = vrot.lane.b32.xlu0 %v406_v48, %s2404_s29  ;;  %p2253_p13 = pnand (%p347_p4), %p2252_p6, %p3185_p10 }
 0x149   : >> { %v470_v50 = vpop.permute.xlu1 %469  ;;  %v459_v53 = vpop.permute.xlu0 %458  ;;  %p2260_p8 = por (%p347_p4), %p2259_p5, %p2258_p0 }
 0x14a   : >> { %v472_v51 = vmul.f32 %v470_v50, %v2824_v49  ;;  %v461_v56 = vmul.f32 %v459_v53, %v2824_v49  ;;  %v520_v62 = vmul.f32 %v2841_v60, %v459_v53  ;;  %v526_v31 = vmul.f32 %v2841_v60, %v470_v50  ;;  %p2254_p11 = pneg (%p347_p4), %p2253_p13 }
 0x14b   : >> { %v575_v42 = vmul.f32 %v2861_v37, %v470_v50  ;;  %v569_v48 = vmul.f32 %v2861_v37, %v459_v53 }
 0x14c   : >> { %474 = vrot.lane.b32.xlu1 %v472_v51, %s2404_s29  ;;  %441 = vrot.lane.b32.xlu0 %v439_v52, %s2404_s29  ;;  %v378_v51 = vunpack.c.l.bf16 %v1756_v44  ;;  %v606_v52 = vmul.f32 %v2861_v37, %v437_v46  ;;  %p2261_p12 = pnand (%p347_p4), %p2260_p8, %p2254_p11 }
 0x14d   : >> { %v2892_v41 = vpop.permute.xlu0 %381 }
 0x150   : >> { %496 = vrot.lane.b32.xlu1 %v494_v55, %s2404_s29  ;;  %463 = vrot.lane.b32.xlu0 %v461_v56, %s2403_s16  ;;  %v2881_v55 = vrot.slane %v378_v51, %v2801_v36  ;;  %v600_v56 = vmul.f32 %v2861_v37, %v2809_v40  ;;  %v2894_v36 = vpop.permute.xlu1 %414  ;;  %v486_v51 = vmul.f32 %v2804_v38, %v2892_v41 }
 0x152   : >> { %v624_v47 = vmul.f32 %v2881_v55, %v470_v50  ;;  %v618_v46 = vmul.f32 %v2881_v55, %v459_v53 }
 0x154   : >> { %510 = vrot.lane.b32.xlu1 %v508_v58, %s2404_s29  ;;  %490 = vrot.lane.b32.xlu0 %v488_v59, %s2403_s16  ;;  %v388_v58 = vmul.f32 %v2807_v39, %v2892_v41  ;;  %v2898_v59 = vpop.permute.xlu1 %447 }
 0x158   : >> { %522 = vrot.lane.b32.xlu1 %v520_v62, %s2403_s16  ;;  %504 = vrot.lane.b32.xlu0 %v502_v63, %s2403_s16  ;;  %v421_v62 = vmul.f32 %v2804_v38, %v2894_v36 }
 0x15c   : >> { %528 = vrot.lane.b32.xlu1 %v526_v31, %s2404_s29  ;;  %539 = vrot.lane.b32.xlu0 %v537_v32, %s2403_s16 }
 0x160   : >> { %559 = vrot.lane.b32.xlu1 %v557_v34, %s2404_s29  ;;  %545 = vrot.lane.b32.xlu0 %v543_v35, %s2404_s29  ;;  %v454_v34 = vmul.f32 %v2824_v49, %v2898_v59 }
 0x164   : >> { %577 = vrot.lane.b32.xlu1 %v575_v42, %s2404_s29  ;;  %553 = vrot.lane.b32.xlu0 %v551_v43, %s2403_s16 }
 0x168   : >> { %594 = vrot.lane.b32.xlu1 %v592_v45, %s2404_s29  ;;  %571 = vrot.lane.b32.xlu0 %v569_v48, %s2403_s16 }
 0x16c   : >> { %608 = vrot.lane.b32.xlu1 %v606_v52, %s2404_s29  ;;  %588 = vrot.lane.b32.xlu0 %v586_v54, %s2403_s16 }
 0x170   : >> { %626 = vrot.lane.b32.xlu1 %v624_v47, %s2404_s29  ;;  %602 = vrot.lane.b32.xlu0 %v600_v56, %s2403_s16 }
 0x174   : >> { %620 = vrot.lane.b32.xlu0 %v618_v46, %s2403_s16  ;;  %v535_v46 = vmul.f32 %v2824_v49, %v2892_v41 }
 0x1b6   : >> { %v398_v57 = vpop.permute.xlu0 %397  ;;  %v431_v53 = vpop.permute.xlu1 %430 }
 0x1b7   : >> { %v400_v50 = vadd.f32 %v398_v57, %v388_v58 }
 0x1ba   : >> { %v409_v40 = vpop.permute.xlu0 %408 }
 0x1bb   : >> { %v411_v63 = vadd.f32 %v409_v40, %v400_v50  ;;  %v500_v50 = vmul.f32 %v2824_v49, %v2894_v36  ;;  %v2920_v49 = vcombine.low %v2738_v10, %v2740_v11 }
 0x1bd   : >> { %v422_v30 = vadd.f32 %v421_v62, %v411_v63 }
 0x1be   : >> { %v442_v31 = vpop.permute.xlu0 %441 }
 0x1bf   : >> { %v433_v32 = vadd.f32 %v431_v53, %v422_v30 }
 0x1c1   : >> { %v444_v33 = vadd.f32 %v442_v31, %v433_v32  ;;  %v549_v32 = vmul.f32 %v2841_v60, %v2894_v36 }
 0x1c2   : >> { %v464_v35 = vpop.permute.xlu0 %463 }
 0x1c3   : >> { %v455_v42 = vadd.f32 %v454_v34, %v444_v33 }
 0x1c5   : >> { %v466_v44 = vadd.f32 %v464_v35, %v455_v42 }
 0x1c6   : >> { %v491_v43 = vpop.permute.xlu0 %490 }
 0x1c7   : >> { %v2904_v39 = vpop.permute.xlu1 %480  ;;  %v493_v54 = vadd.f32 %v491_v43, %v486_v51  ;;  %v518_v43 = vmul.f32 %v2841_v60, %v2898_v59 }
 0x1ca   : >> { %v505_v45 = vpop.permute.xlu0 %504 }
 0x1cb   : >> { %v475_v48 = vpop.permute.xlu1 %474 }
 0x1cc   : >> { %v477_v52 = vadd.f32 %v475_v48, %v466_v44 }
 0x1ce   : >> { %v483_v47 = vadd.f32 %v2904_v39, %v477_v52  ;;  %v540_v56 = vpop.permute.xlu0 %539 }
 0x1cf   : >> { %v497_v57 = vpop.permute.xlu1 %496  ;;  %v542_v62 = vadd.f32 %v540_v56, %v535_v46 }
 0x1d0   : >> { %v484_v58 = vmax.f32 %v483_v47, 0.0  ;;  %v499_v40 = vadd.f32 %v497_v57, %v493_v54 }
 0x1d2   : >> { %v485_v63 = vpack.c.bf16 %v484_v58, %v484_v58  ;;  %v501_v30 = vadd.f32 %v500_v50, %v499_v40  ;;  %v546_v53 = vpop.permute.xlu0 %545  ;;  %v567_v50 = vmul.f32 %v2861_v37, %v2898_v59 }
 0x1d3   : >> { %v548_v38 = vadd.f32 %v546_v53, %v542_v62  ;;  %v511_v31 = vpop.permute.xlu1 %510 }
 0x1d4   : >> { %v507_v33 = vadd.f32 %v505_v45, %v501_v30  ;;  %747 = vrot.lane.b32.xlu1 %v485_v63, %s2404_s29  ;;  %639 = vrot.lane.b32.xlu0 %v485_v63, %s2403_s16  ;;  %v699_v34 = vsel %vm645_vm1, %v485_v63, 0 }
 0x1d5   : >> { %1840 = vmatpush3.bf16.msra.mxu1 %v699_v34  ;;  %v550_v35 = vadd.f32 %v549_v32, %v548_v38  ;;  %v584_v38 = vmul.f32 %v2841_v60, %v2892_v41  ;;  %v598_v41 = vmul.f32 %v2861_v37, %v2894_v36 }
 0x1d6   : >> { %v513_v42 = vadd.f32 %v511_v31, %v507_v33  ;;  %1851 = vmatprep.subr.bf16.mxu1 %v2405_v61  ;;  %v554_v44 = vpop.permute.xlu0 %553  ;;  %v2941_v33 = vcombine.low %v2750_v16, %v2752_v17 }
 0x1d7   : >> { %v523_v45 = vpop.permute.xlu1 %522  ;;  %v556_v56 = vadd.f32 %v554_v44, %v550_v35 }
 0x1d8   : >> { %v519_v48 = vadd.f32 %v518_v43, %v513_v42  ;;  %1842 = vmatmul.mubr.msk.bf16.vlgmr.msra.gmra.mrb[0].mxu1 %vm641_vm2, %v2920_v49 }
 0x1d9   : >> { %1853 = vmatprep.mubr.msk.bf16.mxu1 %vm2406_vm0, %v2405_v61 }
 0x1da   : >> { %v525_v51 = vadd.f32 %v523_v45, %v519_v48  ;;  %v572_v47 = vpop.permute.xlu0 %571 }
 0x1db   : >> { %v529_v52 = vpop.permute.xlu1 %528 }
 0x1dc   : >> { %v531_v54 = vadd.f32 %v529_v52, %v525_v51 }
 0x1de   : >> { %v532_v46 = vadd.f32 %v531_v54, %v2904_v39  ;;  %v589_v30 = vpop.permute.xlu0 %588 }
 0x1df   : >> { %v560_v57 = vpop.permute.xlu1 %559  ;;  %v591_v34 = vadd.f32 %v589_v30, %v584_v38 }
 0x1e0   : >> { %v533_v58 = vmax.f32 %v532_v46, 0.0  ;;  %v562_v40 = vadd.f32 %v560_v57, %v556_v56 }
 0x1e2   : >> { %v534_v62 = vpack.c.bf16 %v533_v58, %v533_v58  ;;  %v568_v63 = vadd.f32 %v567_v50, %v562_v40  ;;  %v603_v48 = vpop.permute.xlu0 %602 }
 0x1e3   : >> { %v578_v53 = vpop.permute.xlu1 %577 }
 0x1e4   : >> { %v574_v31 = vadd.f32 %v572_v47, %v568_v63  ;;  %914 = vrot.lane.b32.xlu1 %v534_v62, %s2404_s29  ;;  %858 = vrot.lane.b32.xlu0 %v534_v62, %s2403_s16  ;;  %v2937_v32 = vsel %vm645_vm1, %v534_v62, 0  ;;  %v616_v47 = vmul.f32 %v2881_v55, %v2898_v59  ;;  %v1757_v63 = vcombine.low %v2742_v12, %v2744_v13 }
 0x1e5   : >> { %1852 = vmatpush3.bf16.msra.mxu1 %v2937_v32 }
 0x1e6   : >> { %v580_v35 = vadd.f32 %v578_v53, %v574_v31  ;;  %1863 = vmatprep.subr.bf16.mxu1 %v2405_v61  ;;  %v621_v36 = vpop.permute.xlu0 %620  ;;  %v1761_v53 = vcombine.low %v2746_v14, %v2748_v15 }
 0x1e7   : >> { %v595_v42 = vpop.permute.xlu1 %594 }
 0x1e8   : >> { %v581_v60 = vadd.f32 %v580_v35, %v2904_v39  ;;  %v597_v43 = vadd.f32 %v595_v42, %v591_v34  ;;  %1854 = vmatmul.mubr.msk.bf16.vlgmr.msra.gmra.mrb[4].mxu1 %vm641_vm2, %v2941_v33  ;;  %v1765_v42 = vcombine.low %v2754_v18, %v2756_v19 }
 0x1e9   : >> { %1865 = vmatprep.mubr.msk.bf16.mxu1 %vm2406_vm0, %v2405_v61 }
 0x1ea   : >> { %v582_v44 = vmax.f32 %v581_v60, 0.0  ;;  %v599_v45 = vadd.f32 %v598_v41, %v597_v43  ;;  %v1767_v60 = vcombine.low %v2758_v20, %v2760_v21  ;;  %v1769_v43 = vcombine.low %v2762_v22, %v2764_v23 }
 0x1eb   : >> { %v609_v54 = vpop.permute.xlu1 %608 }
 0x1ec   : >> { %v583_v51 = vpack.c.bf16 %v582_v44, %v582_v44  ;;  %v605_v52 = vadd.f32 %v603_v48, %v599_v45 }
 0x1ee   : >> { %v611_v56 = vadd.f32 %v609_v54, %v605_v52  ;;  %1081 = vrot.lane.b32.xlu1 %v583_v51, %s2404_s29  ;;  %1025 = vrot.lane.b32.xlu0 %v583_v51, %s2403_s16  ;;  %v974_v41 = vsel %vm645_vm1, %v583_v51, 0  ;;  %v1771_v52 = vcombine.low %v2766_v24, %v2768_v25  ;;  %v1773_v54 = vcombine.low %v2770_v26, %v2772_v27 }
 0x1ef   : >> { %v627_v57 = vpop.permute.xlu1 %626 }
 0x1f0   : >> { %v617_v37 = vadd.f32 %v616_v47, %v611_v56 }
 0x1f2   : >> { %v623_v46 = vadd.f32 %v621_v36, %v617_v37 }
 0x1f4   : >> { %v629_v58 = vadd.f32 %v627_v57, %v623_v46 }
 0x1f6   : >> { %v630_v50 = vadd.f32 %v629_v58, %v2904_v39 }
 0x1f8   : >> { %v631_v40 = vmax.f32 %v630_v50, 0.0 }
 0x1fa   : >> { %v2957_v62 = vpack.c.bf16 %v631_v40, %v631_v40 }
 0x1fc   : >> { %1495 = vrot.lane.b32.xlu1 %v2957_v62, %s2404_s29  ;;  %1447 = vrot.lane.b32.xlu0 %v2957_v62, %s2403_s16  ;;  %s1577_s16 = sadd.s32 (%p347_p4), %s1942_s9, %s1796_s19 }
 0x1fd   : > { %s1789_s29 = sshll.u32 (%p347_p4), %s1577_s16, 6 }
 0x1fe   : > { %s3066_s30 = scalar_lea.hbm (%p347_p4), %s3183_s7, %s1789_s29 }
 0x200   : >> { %1139 = vperm.xlu1 %2108, %v2776_v29   ;;  %1134 = vperm.xlu0 %2107, %v2774_v28  }
 0x246   : >> { %v640_v55 = vpop.permute.xlu0 %639  ;;  %v748_v39 = vpop.permute.xlu1 %747 }
 0x247   : >> { %v647_v59 = vsel %vm645_vm1, %v640_v55, 0  ;;  %v753_v30 = vsel %vm645_vm1, %v748_v39, 0 }
 0x248   : >> { %1834 = vmatpush3.bf16.msra.mxu0 %v647_v59 }
 0x249   : >> { %1845 = vmatprep.subr.bf16.mxu0 %v2405_v61 }
 0x24b   : >> { %1836 = vmatmul.mubr.msk.bf16.vlgmr.msra.gmra.mrb[0].mxu0 %vm641_vm2, %v1757_v63 }
 0x24c   : >> { %1846 = vmatpush3.bf16.msra.mxu0 %v753_v30  ;;  %1847 = vmatprep.mubr.msk.bf16.mxu0 %vm2406_vm0, %v2405_v61 }
 0x24d   : >> { %1857 = vmatprep.subr.bf16.mxu0 %v2405_v61 }
 0x253   : >> { %1848 = vmatmul.mubr.msk.bf16.vlgmr.msra.gmra.mrb[4].mxu0 %vm641_vm2, %v1761_v53 }
 0x254   : >> { %1859 = vmatprep.mubr.msk.bf16.mxu0 %vm2406_vm0, %v2405_v61 }
 0x256   : >> { %v915_v38 = vpop.permute.xlu1 %914  ;;  %v859_v31 = vpop.permute.xlu0 %858 }
 0x257   : >> { %v920_v34 = vsel %vm645_vm1, %v915_v38, 0  ;;  %v864_v35 = vsel %vm645_vm1, %v859_v31, 0 }
 0x258   : >> { %1858 = vmatpush3.bf16.msra.mxu0 %v864_v35  ;;  %1864 = vmatpush3.bf16.msra.mxu1 %v920_v34 }
 0x259   : >> { %1869 = vmatprep.subr.bf16.mxu0 %v2405_v61  ;;  %1875 = vmatprep.subr.bf16.mxu1 %v2405_v61 }
 0x25b   : >> { %1860 = vmatmul.mubr.msk.bf16.vlgmr.msra.gmra.mrb[8].mxu0 %vm641_vm2, %v1765_v42  ;;  %1866 = vmatmul.mubr.msk.bf16.vlgmr.msra.gmra.mrb[8].mxu1 %vm641_vm2, %v1767_v60 }
 0x25c   : >> { %1870 = vmatpush3.bf16.msra.mxu0 %v974_v41  ;;  %1871 = vmatprep.mubr.msk.bf16.mxu0 %vm2406_vm0, %v2405_v61 }
 0x25d   : >> { %1881 = vmatprep.subr.bf16.mxu0 %v2405_v61  ;;  %1877 = vmatprep.mubr.msk.bf16.mxu1 %vm2406_vm0, %v2405_v61 }
 0x260   : >> { %v1082_v44 = vpop.permute.xlu1 %1081  ;;  %v1026_v45 = vpop.permute.xlu0 %1025 }
 0x261   : >> { %v1087_v48 = vsel %vm645_vm1, %v1082_v44, 0  ;;  %v1031_v51 = vsel %vm645_vm1, %v1026_v45, 0 }
 0x262   : >> { %1876 = vmatpush3.bf16.msra.mxu1 %v1031_v51 }
 0x263   : >> { %1872 = vmatmul.mubr.msk.bf16.vlgmr.msra.gmra.mrb[12].mxu0 %vm641_vm2, %v1769_v43  ;;  %1887 = vmatprep.subr.bf16.mxu1 %v2405_v61 }
 0x264   : >> { %1882 = vmatpush3.bf16.msra.mxu0 %v1087_v48  ;;  %1883 = vmatprep.mubr.msk.bf16.mxu0 %vm2406_vm0, %v2405_v61 }
 0x265   : >> { %1878 = vmatmul.mubr.msk.bf16.vlgmr.msra.gmra.mrb[12].mxu1 %vm641_vm2, %v1771_v52  ;;  %1893 = vmatprep.subr.bf16.mxu0 %v2405_v61 }
 0x266   : >> { %1888 = vmatpush3.bf16.msra.mxu1 %v864_v35  ;;  %1889 = vmatprep.mubr.msk.bf16.mxu1 %vm2406_vm0, %v2405_v61 }
 0x267   : >> { %1899 = vmatprep.subr.bf16.mxu1 %v2405_v61 }
 0x26b   : >> { %1884 = vmatmul.mubr.msk.bf16.vlgmr.msra.gmra.mrb[16].mxu0 %vm641_vm2, %v1773_v54 }
 0x26c   : >> { %1894 = vmatpush3.bf16.msra.mxu0 %v2937_v32  ;;  %1895 = vmatprep.mubr.msk.bf16.mxu0 %vm2406_vm0, %v2405_v61 }
 0x26d   : >> { %1890 = vmatmul.mubr.msk.bf16.vlgmr.msra.gmra.mrb[16].mxu1 %vm641_vm2, %v1757_v63  ;;  %1905 = vmatprep.subr.bf16.mxu0 %v2405_v61 }
 0x26e   : >> { %1900 = vmatpush3.bf16.msra.mxu1 %v920_v34  ;;  %1901 = vmatprep.mubr.msk.bf16.mxu1 %vm2406_vm0, %v2405_v61  ;;  %v1448_v32 = vpop.permute.xlu0 %1447  ;;  %v1496_v47 = vpop.permute.xlu1 %1495 }
 0x26f   : >> { %1911 = vmatprep.subr.bf16.mxu1 %v2405_v61  ;;  %v1498_v56 = vsel %vm645_vm1, %v1496_v47, 0 }
 0x273   : >> { %1896 = vmatmul.mubr.msk.bf16.vlgmr.msra.gmra.mrb[20].mxu0 %vm641_vm2, %v2920_v49  ;;  %v1401_v49 = vsel %vm645_vm1, %v2957_v62, 0 }
 0x274   : >> { %1906 = vmatpush3.bf16.msra.mxu0 %v974_v41  ;;  %1907 = vmatprep.mubr.msk.bf16.mxu0 %vm2406_vm0, %v2405_v61 }
 0x275   : >> { %1902 = vmatmul.mubr.msk.bf16.vlgmr.msra.gmra.mrb[20].mxu1 %vm641_vm2, %v1761_v53  ;;  %1917 = vmatprep.subr.bf16.mxu0 %v2405_v61 }
 0x276   : >> { %1912 = vmatpush3.bf16.msra.mxu1 %v1031_v51  ;;  %1913 = vmatprep.mubr.msk.bf16.mxu1 %vm2406_vm0, %v2405_v61 }
 0x277   : >> { %1923 = vmatprep.subr.bf16.mxu1 %v2405_v61 }
 0x27b   : >> { %1908 = vmatmul.mubr.msk.bf16.vlgmr.msra.gmra.mrb[24].mxu0 %vm641_vm2, %v2941_v33  ;;  %v1450_v33 = vsel %vm645_vm1, %v1448_v32, 0 }
 0x27c   : >> { %1918 = vmatpush3.bf16.msra.mxu0 %v1087_v48  ;;  %1919 = vmatprep.mubr.msk.bf16.mxu0 %vm2406_vm0, %v2405_v61 }
 0x27d   : >> { %1914 = vmatmul.mubr.msk.bf16.vlgmr.msra.gmra.mrb[24].mxu1 %vm641_vm2, %v1765_v42  ;;  %1929 = vmatprep.subr.bf16.mxu0 %v2405_v61 }
 0x27e   : >> { %1924 = vmatpush3.bf16.msra.mxu1 %v1401_v49  ;;  %1925 = vmatprep.mubr.msk.bf16.mxu1 %vm2406_vm0, %v2405_v61 }
 0x27f   : >> { %1935 = vmatprep.subr.bf16.mxu1 %v2405_v61 }
 0x283   : >> { %1920 = vmatmul.mubr.msk.bf16.vlgmr.msra.gmra.mrb[28].mxu0 %vm641_vm2, %v1767_v60 }
 0x284   : >> { %1930 = vmatpush3.bf16.msra.mxu0 %v1450_v33  ;;  %1931 = vmatprep.mubr.msk.bf16.mxu0 %vm2406_vm0, %v2405_v61 }
 0x285   : >> { %1926 = vmatmul.mubr.msk.bf16.vlgmr.msra.gmra.mrb[28].mxu1 %vm641_vm2, %v1769_v43 }
 0x286   : >> { %1936 = vmatpush3.bf16.msra.mxu1 %v1498_v56  ;;  %1937 = vmatprep.mubr.msk.bf16.mxu1 %vm2406_vm0, %v2405_v61 }
 0x28b   : >> { %1932 = vmatmul.mubr.msk.bf16.vlgmr.msra.gmra.mrb[32].mxu0 %vm641_vm2, %v1771_v52 }
 0x28d   : >> { %1938 = vmatmul.mubr.msk.bf16.vlgmr.msra.gmra.mrb[32].mxu1 %vm641_vm2, %v1773_v54 }
 0x2ab   : >> { %v735_v37 = vpop.f32.mrb[0].mxu1 }
 0x2ac   : >> { %v1843_v36 = vpop.f32.mrb[1].mxu1 }
 0x2ad   : >> { %v738_v46 = vpop.f32.mrb[2].mxu1 }
 0x2ae   : >> { %v1844_v57 = vpop.f32.mrb[3].mxu1 }
 0x2bb   : >> { %v843_v58 = vpop.f32.mrb[4].mxu1 }
 0x2bc   : >> { %v1855_v50 = vpop.f32.mrb[5].mxu1 }
 0x2bd   : >> { %v846_v40 = vpop.f32.mrb[6].mxu1 }
 0x2be   : >> { %v1856_v62 = vpop.f32.mrb[7].mxu1 }
 0x31e   : >> { %v683_v55 = vpop.f32.mrb[0].mxu0 }
 0x31f   : >> { %v1837_v59 = vpop.f32.mrb[1].mxu0  ;;  %v736_v63 = vadd.f32 %v735_v37, %v683_v55 }
 0x320   : >> { %v686_v39 = vpop.f32.mrb[2].mxu0 }
 0x321   : >> { %v1838_v30 = vpop.f32.mrb[3].mxu0  ;;  %v739_v53 = vadd.f32 %v738_v46, %v686_v39 }
 0x326   : >> { %v789_v38 = vpop.f32.mrb[4].mxu0 }
 0x327   : >> { %v796_v61 = vadd.f32 %v789_v38, %v736_v63  ;;  %v1849_v31 = vpop.f32.mrb[5].mxu0 }
 0x328   : >> { %v792_v34 = vpop.f32.mrb[6].mxu0 }
 0x329   : >> { %v797_v35 = vadd.f32 %v792_v34, %v739_v53  ;;  %v850_v42 = vadd.f32 %v843_v58, %v796_v61  ;;  %v1850_v60 = vpop.f32.mrb[7].mxu0 }
 0x32b   : >> { %v851_v41 = vadd.f32 %v846_v40, %v797_v35 }
 0x32e   : >> { %v900_v43 = vpop.f32.mrb[8].mxu0  ;;  %v956_v44 = vpop.f32.mrb[8].mxu1 }
 0x32f   : >> { %v907_v45 = vadd.f32 %v900_v43, %v850_v42  ;;  %v1861_v48 = vpop.f32.mrb[9].mxu0  ;;  %v1867_v51 = vpop.f32.mrb[9].mxu1 }
 0x330   : >> { %v903_v52 = vpop.f32.mrb[10].mxu0  ;;  %v959_v54 = vpop.f32.mrb[10].mxu1 }
 0x331   : >> { %v908_v49 = vadd.f32 %v903_v52, %v851_v41  ;;  %v963_v32 = vadd.f32 %v956_v44, %v907_v45  ;;  %v1862_v47 = vpop.f32.mrb[11].mxu0  ;;  %v1868_v33 = vpop.f32.mrb[11].mxu1 }
 0x333   : >> { %v964_v56 = vadd.f32 %v959_v54, %v908_v49 }
 0x336   : >> { %v1010_v37 = vpop.f32.mrb[12].mxu0 }
 0x337   : >> { %v1017_v36 = vadd.f32 %v1010_v37, %v963_v32  ;;  %v1873_v46 = vpop.f32.mrb[13].mxu0 }
 0x338   : >> { %v1013_v57 = vpop.f32.mrb[14].mxu0  ;;  %v1067_v50 = vpop.f32.mrb[12].mxu1 }
 0x339   : >> { %v1018_v58 = vadd.f32 %v1013_v57, %v964_v56  ;;  %v1074_v62 = vadd.f32 %v1067_v50, %v1017_v36  ;;  %v1879_v40 = vpop.f32.mrb[13].mxu1  ;;  %v1874_v55 = vpop.f32.mrb[15].mxu0 }
 0x33a   : >> { %v1070_v59 = vpop.f32.mrb[14].mxu1 }
 0x33b   : >> { %v1075_v63 = vadd.f32 %v1070_v59, %v1018_v58  ;;  %v1880_v39 = vpop.f32.mrb[15].mxu1 }
 0x33e   : >> { %v1123_v30 = vpop.f32.mrb[16].mxu0 }
 0x33f   : >> { %v1130_v53 = vadd.f32 %v1123_v30, %v1074_v62  ;;  %v1885_v38 = vpop.f32.mrb[17].mxu0 }
 0x340   : >> { %v1126_v61 = vpop.f32.mrb[18].mxu0  ;;  %v1180_v31 = vpop.f32.mrb[16].mxu1 }
 0x341   : >> { %v1131_v34 = vadd.f32 %v1126_v61, %v1075_v63  ;;  %v1886_v35 = vpop.f32.mrb[19].mxu0  ;;  %v1891_v42 = vpop.f32.mrb[17].mxu1 }
 0x342   : >> { %v1183_v60 = vpop.f32.mrb[18].mxu1 }
 0x343   : >> { %v1892_v41 = vpop.f32.mrb[19].mxu1 }
 0x346   : >> { %v1221_v43 = vpop.f32.mrb[20].mxu0 }
 0x347   : >> { %v1222_v44 = vadd.f32 %v1221_v43, %v1180_v31  ;;  %v1897_v45 = vpop.f32.mrb[21].mxu0 }
 0x348   : >> { %v1224_v48 = vpop.f32.mrb[22].mxu0  ;;  %v1262_v51 = vpop.f32.mrb[20].mxu1 }
 0x349   : >> { %v1225_v52 = vadd.f32 %v1224_v48, %v1183_v60  ;;  %v1269_v54 = vadd.f32 %v1262_v51, %v1222_v44  ;;  %v1903_v49 = vpop.f32.mrb[21].mxu1  ;;  %v1898_v32 = vpop.f32.mrb[23].mxu0 }
 0x34a   : >> { %v1265_v47 = vpop.f32.mrb[22].mxu1 }
 0x34b   : >> { %v1270_v33 = vadd.f32 %v1265_v47, %v1225_v52  ;;  %v1904_v56 = vpop.f32.mrb[23].mxu1  ;;  %v1135_v52 = vpop.permute.xlu0 %1134 }
 0x34e   : >> { %v1305_v37 = vpop.f32.mrb[24].mxu0 }
 0x34f   : >> { %v1312_v36 = vadd.f32 %v1305_v37, %v1269_v54  ;;  %v1909_v46 = vpop.f32.mrb[25].mxu0 }
 0x350   : >> { %v1308_v57 = vpop.f32.mrb[26].mxu0  ;;  %v1348_v50 = vpop.f32.mrb[24].mxu1 }
 0x351   : >> { %v1313_v58 = vadd.f32 %v1308_v57, %v1270_v33  ;;  %v1355_v62 = vadd.f32 %v1348_v50, %v1312_v36  ;;  %v1915_v40 = vpop.f32.mrb[25].mxu1  ;;  %v1910_v55 = vpop.f32.mrb[27].mxu0  ;;  %v1142_v33 = vadd.f32 %v1135_v52, %v1130_v53 }
 0x352   : >> { %v1351_v59 = vpop.f32.mrb[26].mxu1  ;;  %v1140_v57 = vpop.permute.xlu1 %1139 }
 0x353   : >> { %v1356_v63 = vadd.f32 %v1351_v59, %v1313_v58  ;;  %v1916_v39 = vpop.f32.mrb[27].mxu1  ;;  %v1143_v58 = vadd.f32 %v1140_v57, %v1131_v34  ;;  %v1144_v59 = vmax.f32 %v1142_v33, 0.0 }
 0x356   : >> { %v1391_v30 = vpop.f32.mrb[28].mxu0 }
 0x357   : >> { %v1398_v38 = vadd.f32 %v1391_v30, %v1355_v62  ;;  %v1921_v61 = vpop.f32.mrb[29].mxu0  ;;  %v1145_v30 = vmax.f32 %v1143_v58, 0.0 }
 0x358   : >> { %v1394_v31 = vpop.f32.mrb[30].mxu0  ;;  %v1437_v35 = vpop.f32.mrb[28].mxu1 }
 0x359   : >> { %v1399_v42 = vadd.f32 %v1394_v31, %v1356_v63  ;;  %v1444_v60 = vadd.f32 %v1437_v35, %v1398_v38  ;;  %v1927_v41 = vpop.f32.mrb[29].mxu1  ;;  %v1922_v43 = vpop.f32.mrb[31].mxu0 }
 0x35a   : >> { %v1440_v44 = vpop.f32.mrb[30].mxu1 }
 0x35b   : >> { %v1445_v45 = vadd.f32 %v1440_v44, %v1399_v42  ;;  %v1928_v48 = vpop.f32.mrb[31].mxu1 }
 0x35e   : >> { %v1486_v51 = vpop.f32.mrb[32].mxu0 }
 0x35f   : >> { %v1493_v54 = vadd.f32 %v1486_v51, %v1444_v60  ;;  %v1933_v49 = vpop.f32.mrb[33].mxu0 }
 0x360   : >> { %v1489_v32 = vpop.f32.mrb[34].mxu0  ;;  %v1534_v47 = vpop.f32.mrb[32].mxu1 }
 0x361   : >> { %v1494_v56 = vadd.f32 %v1489_v32, %v1445_v45  ;;  %v1541_v37 = vadd.f32 %v1534_v47, %v1493_v54  ;;  %v1939_v36 = vpop.f32.mrb[33].mxu1  ;;  %v1934_v46 = vpop.f32.mrb[35].mxu0 }
 0x362   : >> { %v1537_v50 = vpop.f32.mrb[34].mxu1 }
 0x363   : >> { %v1543_v62 = vadd.f32 %v1541_v37, %v1135_v52  ;;  %v1542_v40 = vadd.f32 %v1537_v50, %v1494_v56  ;;  %v1940_v55 = vpop.f32.mrb[35].mxu1 }
 0x365   : >> { %v1545_v63 = vmax.f32 %v1543_v62, 0.0  ;;  %v1544_v39 = vadd.f32 %v1542_v40, %v1140_v57 }
 0x367   : >> { %v1547_v38 = vmax.f32 %v1144_v59, %v1545_v63  ;;  %v1546_v61 = vmax.f32 %v1544_v39, 0.0  ;;  %349 = sbr.rel (!%p347_p4) target bundleno = 192 (0xc0), region = 115 }
 0x369   : >> { %v1793_v53 = vpack.c.bf16 %v1547_v38, %v1547_v38  ;;  %v1548_v31 = vmax.f32 %v1145_v30, %v1546_v61 }
 0x36b   : >> { %1561 = vst.msk [vmem:[%s1559_s24] sm:$0xf] %vm1560_vm3, %v1793_v53  ;;  %v1794_v35 = vpack.c.bf16 %v1548_v31, %v1548_v31 }
 0x36d   : >> { %1562 = vst.msk [vmem:[%s1559_s24 + $0x4] sm:$0xf] %vm1560_vm3, %v1794_v35 }
 0x36e   : > { %2264 = shalt.err (!%p2261_p12)
}
 0x36f   : > { %s2265_s10 = scalar_lea.hbm %s3066_s30, 384  ;;  %s2269_s9 = scalar_lea.hbm %s3183_s7, 1536 }
 0x370   : > { %p2266_p2 = scmp.ne.s32.totalorder %s3066_s30, %s2265_s10  ;;  %p2270_p1 = scmp.lt.u32.totalorder %s3066_s30, %s3183_s7 }
 0x371   : > { %p2271_p3 = scmp.lt.u32.totalorder %s2269_s9, %s2265_s10  ;;  %p2273_p6 = scmp.lt.u32.totalorder %s2265_s10, %s3066_s30 }
 0x372   : > { %p2267_p7 = pnand %p2266_p2, %p3185_p10 }
 0x373   : > { %p2272_p4 = por %p2271_p3, %p2270_p1 }
 0x374   : > { %p2268_p9 = pneg %p2267_p7 }
 0x375   : > { %p2274_p13 = por %p2273_p6, %p2272_p4 }
 0x377   : > { %p2275_p11 = pnand %p2274_p13, %p2268_p9 }
 0x379   : > { %2278 = shalt.err (!%p2275_p11)
}
 0x37a   : > { %s2408_s0 = smov 64   ;;  %s2409_s14 = smov 4  }
 0x37b   : > { %1961 = dma.vmem_to_hbm [thread:$0]  (%p3185_p10), %s3061_s21, 384, %s3066_s30, %s3070_s18, %s2408_s0, %s2408_s0, %s2409_s14  }
 0x37c PF: > { %s3186_s24 = sld [smem:[#allocation16_spill]]  ;;  %s3187_s17 = sld [smem:[#allocation21_spill]] }
 0x37d   : > { %p1993_p0 = scmp.ge.s32.totalorder %s2385_s28, 2 }
 0x382   : > { %s1595_s12 = sand.u32 1, %s3186_s24   ;;  %p3188_p5 = scmp.ne.s32.totalorder %s3187_s17, 0 }
 0x383   : > { %s1596_s6 = scalar_lea.sflag [#allocation4], %s1595_s12 }
 0x384   : > { %p1981_p8 = pnand %p1993_p0, %p3188_p5 }
 0x386   : > { %2340 = dma.done.wait (!%p1981_p8), %s1596_s6, 384  }
 0x387   : > { %2342 = vsyncadd (!%p1981_p8), %s1596_s6, 4294966912  ;;  %s23_s28 = sadd.s32 1, %s2385_s28   ;;  %s3189_s18 = sld [smem:[#allocation17_spill]] }
 0x388   : > { %p20_p12 = scmp.ge.s32.totalorder %s23_s28, 6   ;;  %s3190_s19 = smov %s2353_s20 }
 0x389   : > { %s3191_s20 = smov %s2650_s8  ;;  %s3192_s21 = smov %s2361_s22 }
 0x38a   : > { %s3193_s22 = smov %s2365_s23  ;;  %s3194_s23 = smov %s2647_s25 }
 0x38b   : > { %s3195_s24 = smov %s2377_s26  ;;  %s3196_s25 = smov %s2381_s27 }
 0x38c   : > { %s3197_s26 = smov %s3200_s13  ;;  %s3198_s27 = smov %s3204_s11 }
 0x38d   :  { %22 = sbr.rel (!%p20_p12) target bundleno = 15 (0xf), region = 126 }
 0x394   :  { %1601 = vsyncpa [#allocation3], 1 }
 0x395   :  { %1603 = vsyncpa [#allocation3 + $0x1], 1 }
 0x396   :  { %1604 = vsyncpa [#allocation6], 1 }
 0x397   :  { %1605 = vsyncpa [#allocation9], 1 }
 0x398   :  { %1606 = vsyncpa [#allocation4], 1 }
 0x399   :  { %1608 = vsyncpa [#allocation4 + $0x1], 1 }

</bundles_post_ra>
